<compile_context>
chip_gen: v7x
topology: tpu7x:2x2x1
jax: 0.10.0
libtpu: 0.0.40
codegen_flags: <defaults>
</compile_context>

<pallas_src>
import jax
import jax.numpy as jnp
from jax.experimental import pallas as pl
from jax.experimental.pallas import tpu as pltpu

K = 3          # conv kernel size
SCALE = 4      # 2x nearest upsample applied twice


def conv_upsample_kernel(x_ref, wb_ref, b_ref, rw_ref, rh_ref, o_ref):
    """One batch element per grid step. Everything stays lane-dense.

    x_ref : (1, H, W*Cin)                 input rows, channels folded into lanes
    wb_ref: (K, W*Cin, Wo*Cout)           row-banded conv weights (one per kh)
    b_ref : (1, Wo*Cout)                  bias tiled across Wo
    rw_ref: (Wo*Cout, SCALE*Wo*Cout)      0/1 width-replication matrix
    rh_ref: (SCALE*Ho, Ho)                0/1 height-replication matrix
    o_ref : (1, SCALE*Ho, SCALE*Wo*Cout)  lane-dense output slab
    """
    Ho = rh_ref.shape[1]
    WoCout = wb_ref.shape[2]

    # ---- VALID 3x3 conv as K row-banded matmuls (contraction depth W*Cin) ----
    acc = jnp.zeros((Ho, WoCout), dtype=jnp.float32)
    for kh in range(K):
        acc = acc + jnp.dot(
            x_ref[0, kh:kh + Ho, :],            # (Ho, W*Cin), static slice
            wb_ref[kh],                         # (W*Cin, Wo*Cout)
            preferred_element_type=jnp.float32,
        )
    acc = acc + b_ref[...]                      # (1, Wo*Cout) broadcasts

    # ---- 4x nearest upsample via constant 0/1 matmuls (MXU, no relayouts) ----
    yw = jnp.dot(acc, rw_ref[...], preferred_element_type=jnp.float32)   # (Ho, S*Wo*Cout)
    out = jnp.dot(rh_ref[...], yw, preferred_element_type=jnp.float32)   # (S*Ho, S*Wo*Cout)

    o_ref[0] = out.astype(o_ref.dtype)


def conv_upsample_nchw(x_nchw, w_hwio, bias):
    """Wrapper: NCHW in -> NCHW out (matching the PyTorch module)."""
    N, Cin, H, W = x_nchw.shape
    Cout = w_hwio.shape[-1]
    Ho, Wo = H - K + 1, W - K + 1
    WCin = W * Cin
    WoCout = Wo * Cout
    Hup = SCALE * Ho
    Wflat = SCALE * WoCout                      # 4*14*16 = 896, multiple of 128
    dtype = x_nchw.dtype

    # --- layout glue (outside the kernel) ---
    x_rows = jnp.transpose(x_nchw, (0, 2, 3, 1)).reshape(N, H, WCin)

    # Row-banded conv weights: wb[kh, wi*Cin+ci, wo*Cout+co] = w[kh, wi-wo, ci, co]
    # for 0 <= wi-wo < K, else 0.
    sel = (jnp.arange(W)[None, :, None]
           == jnp.arange(Wo)[None, None, :] + jnp.arange(K)[:, None, None]
           ).astype(dtype)                                   # (K, W, Wo)
    wb = jnp.einsum('hkio,kwv->hwivo', w_hwio, sel).reshape(K, WCin, WoCout)

    b_tiled = jnp.tile(bias, Wo).reshape(1, WoCout)

    # Width replication matrix: out[:, j] = y[:, (j//Cout//SCALE)*Cout + j%Cout]
    i = jnp.arange(WoCout)[:, None]
    j = jnp.arange(Wflat)[None, :]
    rw = (((j // Cout) // SCALE == i // Cout) & (j % Cout == i % Cout)).astype(dtype)
    # Height replication matrix: out[r, :] = y[r//SCALE, :]
    rh = (jnp.arange(Hup)[:, None] // SCALE == jnp.arange(Ho)[None, :]).astype(dtype)

    out_flat = pl.pallas_call(
        conv_upsample_kernel,
        out_shape=jax.ShapeDtypeStruct((N, Hup, Wflat), dtype),
        grid_spec=pltpu.PrefetchScalarGridSpec(
            num_scalar_prefetch=0,
            grid=(N,),
            in_specs=[
                pl.BlockSpec((1, H, WCin), lambda n: (n, 0, 0)),
                pl.BlockSpec((K, WCin, WoCout), lambda n: (0, 0, 0)),
                pl.BlockSpec((1, WoCout), lambda n: (0, 0)),
                pl.BlockSpec((WoCout, Wflat), lambda n: (0, 0)),
                pl.BlockSpec((Hup, Ho), lambda n: (0, 0)),
            ],
            out_specs=pl.BlockSpec((1, Hup, Wflat), lambda n: (n, 0, 0)),
        ),
        compiler_params=pltpu.CompilerParams(dimension_semantics=("parallel",)),
    )(x_rows, wb, b_tiled, rw, rh)

    out = out_flat.reshape(N, Hup, SCALE * Wo, Cout)         # free un-flatten
    return jnp.transpose(out, (0, 3, 1, 2))                  # back to NCHW


def reference_nchw(x_nchw, w_hwio, bias):
    """Plain-JAX reference for correctness checking."""
    x_nhwc = jnp.transpose(x_nchw, (0, 2, 3, 1))
    y = jax.lax.conv_general_dilated(
        x_nhwc, w_hwio, window_strides=(1, 1), padding="VALID",
        dimension_numbers=("NHWC", "HWIO", "NHWC"))
    y = y + bias[None, None, None, :]
    y = jnp.repeat(y, SCALE, axis=1)
    y = jnp.repeat(y, SCALE, axis=2)
    return jnp.transpose(y, (0, 3, 1, 2))


if __name__ == "__main__":
    key = jax.random.PRNGKey(0)
    k_x, k_w, k_b = jax.random.split(key, 3)

    N, Cin, H, W = 2, 10, 16, 16
    Cout = 16

    x = jax.random.normal(k_x, (N, Cin, H, W), dtype=jnp.float32)
    # Deterministic synthetic parameters (Conv2d(10, 16, kernel_size=3, bias=True)).
    fan_in = Cin * K * K
    w = jax.random.normal(k_w, (K, K, Cin, Cout), dtype=jnp.float32) * (1.0 / fan_in) ** 0.5
    b = jax.random.normal(k_b, (Cout,), dtype=jnp.float32) * 0.1

    out = jax.block_until_ready(conv_upsample_nchw(x, w, b))
    ref = jax.block_until_ready(reference_nchw(x, w, b))

    assert out.shape == (N, Cout, SCALE * (H - K + 1), SCALE * (W - K + 1)), out.shape
    # Tolerance accounts for MXU matmul pass precision on f32 operands.
    assert jnp.allclose(out, ref, atol=1e-3, rtol=1e-2), "mismatch vs reference"
    print("KERNEL_OK")
</pallas_src>

<mosaic_0001>
module attributes {stable_mosaic.version = 11 : i64} {
  func.func @conv_upsample_kernel(%arg0: i32, %arg1: memref<1x16x160xf32, #tpu.memory_space<vmem>>, %arg2: memref<3x160x224xf32, #tpu.memory_space<vmem>>, %arg3: memref<1x224xf32, #tpu.memory_space<vmem>>, %arg4: memref<224x896xf32, #tpu.memory_space<vmem>>, %arg5: memref<56x14xf32, #tpu.memory_space<vmem>>, %arg6: memref<1x56x896xf32, #tpu.memory_space<vmem>>) attributes {dimension_semantics = [#tpu.dimension_semantics<parallel>], iteration_bounds = array<i64: 2>, scalar_prefetch = 0 : i64, scratch_operands = 0 : i64, tpu.core_type = #tpu.core_type<tc>, window_params = [{transform_indices = @transform_0, window_bounds = array<i64: 1, 16, 160>}, {pipeline_mode = #tpu.pipeline_mode<synchronous>, transform_indices = @transform_1, window_bounds = array<i64: 3, 160, 224>}, {pipeline_mode = #tpu.pipeline_mode<synchronous>, transform_indices = @transform_2, window_bounds = array<i64: 1, 224>}, {pipeline_mode = #tpu.pipeline_mode<synchronous>, transform_indices = @transform_3, window_bounds = array<i64: 224, 896>}, {pipeline_mode = #tpu.pipeline_mode<synchronous>, transform_indices = @transform_4, window_bounds = array<i64: 56, 14>}, {transform_indices = @transform_5, window_bounds = array<i64: 1, 56, 896>}]} {
    %cst = arith.constant 0.000000e+00 : f32
    %0 = vector.broadcast %cst : f32 to vector<14x224xf32>
    %c0 = arith.constant 0 : index
    %c0_0 = arith.constant 0 : index
    %c0_1 = arith.constant 0 : index
    %1 = vector.load %arg1[%c0, %c0_0, %c0_1] : memref<1x16x160xf32, #tpu.memory_space<vmem>>, vector<1x14x160xf32>
    %2 = vector.shape_cast %1 : vector<1x14x160xf32> to vector<14x160xf32>
    %c0_2 = arith.constant 0 : index
    %c0_3 = arith.constant 0 : index
    %c0_4 = arith.constant 0 : index
    %3 = vector.load %arg2[%c0_2, %c0_3, %c0_4] : memref<3x160x224xf32, #tpu.memory_space<vmem>>, vector<1x160x224xf32>
    %4 = vector.shape_cast %3 : vector<1x160x224xf32> to vector<160x224xf32>
    %cst_5 = arith.constant dense<0.000000e+00> : vector<14x224xf32>
    %5 = tpu.matmul %2, %4, %cst_5 {dimension_numbers = #tpu.dot_dimension_numbers<[1], [0], [0], [1], [0, 0, 1, 1], [], []>} : vector<14x160xf32>, vector<160x224xf32>, vector<14x224xf32> -> vector<14x224xf32>
    %6 = arith.addf %0, %5 : vector<14x224xf32>
    %c0_6 = arith.constant 0 : index
    %c1 = arith.constant 1 : index
    %c0_7 = arith.constant 0 : index
    %7 = vector.load %arg1[%c0_6, %c1, %c0_7] : memref<1x16x160xf32, #tpu.memory_space<vmem>>, vector<1x14x160xf32>
    %8 = vector.shape_cast %7 : vector<1x14x160xf32> to vector<14x160xf32>
    %c1_8 = arith.constant 1 : index
    %c0_9 = arith.constant 0 : index
    %c0_10 = arith.constant 0 : index
    %9 = vector.load %arg2[%c1_8, %c0_9, %c0_10] : memref<3x160x224xf32, #tpu.memory_space<vmem>>, vector<1x160x224xf32>
    %10 = vector.shape_cast %9 : vector<1x160x224xf32> to vector<160x224xf32>
    %cst_11 = arith.constant dense<0.000000e+00> : vector<14x224xf32>
    %11 = tpu.matmul %8, %10, %cst_11 {dimension_numbers = #tpu.dot_dimension_numbers<[1], [0], [0], [1], [0, 0, 1, 1], [], []>} : vector<14x160xf32>, vector<160x224xf32>, vector<14x224xf32> -> vector<14x224xf32>
    %12 = arith.addf %6, %11 : vector<14x224xf32>
    %c0_12 = arith.constant 0 : index
    %c2 = arith.constant 2 : index
    %c0_13 = arith.constant 0 : index
    %13 = vector.load %arg1[%c0_12, %c2, %c0_13] : memref<1x16x160xf32, #tpu.memory_space<vmem>>, vector<1x14x160xf32>
    %14 = vector.shape_cast %13 : vector<1x14x160xf32> to vector<14x160xf32>
    %c2_14 = arith.constant 2 : index
    %c0_15 = arith.constant 0 : index
    %c0_16 = arith.constant 0 : index
    %15 = vector.load %arg2[%c2_14, %c0_15, %c0_16] : memref<3x160x224xf32, #tpu.memory_space<vmem>>, vector<1x160x224xf32>
    %16 = vector.shape_cast %15 : vector<1x160x224xf32> to vector<160x224xf32>
    %cst_17 = arith.constant dense<0.000000e+00> : vector<14x224xf32>
    %17 = tpu.matmul %14, %16, %cst_17 {dimension_numbers = #tpu.dot_dimension_numbers<[1], [0], [0], [1], [0, 0, 1, 1], [], []>} : vector<14x160xf32>, vector<160x224xf32>, vector<14x224xf32> -> vector<14x224xf32>
    %18 = arith.addf %12, %17 : vector<14x224xf32>
    %c0_18 = arith.constant 0 : index
    %c0_19 = arith.constant 0 : index
    %19 = vector.load %arg3[%c0_18, %c0_19] : memref<1x224xf32, #tpu.memory_space<vmem>>, vector<1x224xf32>
    %20 = vector.broadcast %19 : vector<1x224xf32> to vector<14x224xf32>
    %21 = arith.addf %18, %20 : vector<14x224xf32>
    %c0_20 = arith.constant 0 : index
    %c0_21 = arith.constant 0 : index
    %22 = vector.load %arg4[%c0_20, %c0_21] : memref<224x896xf32, #tpu.memory_space<vmem>>, vector<224x896xf32>
    %cst_22 = arith.constant dense<0.000000e+00> : vector<14x896xf32>
    %23 = tpu.matmul %21, %22, %cst_22 {dimension_numbers = #tpu.dot_dimension_numbers<[1], [0], [0], [1], [0, 0, 1, 1], [], []>} : vector<14x224xf32>, vector<224x896xf32>, vector<14x896xf32> -> vector<14x896xf32>
    %c0_23 = arith.constant 0 : index
    %c0_24 = arith.constant 0 : index
    %24 = vector.load %arg5[%c0_23, %c0_24] : memref<56x14xf32, #tpu.memory_space<vmem>>, vector<56x14xf32>
    %cst_25 = arith.constant dense<0.000000e+00> : vector<56x896xf32>
    %25 = tpu.matmul %24, %23, %cst_25 {dimension_numbers = #tpu.dot_dimension_numbers<[1], [0], [0], [1], [0, 0, 1, 1], [], []>} : vector<56x14xf32>, vector<14x896xf32>, vector<56x896xf32> -> vector<56x896xf32>
    %c0_26 = arith.constant 0 : index
    %c0_27 = arith.constant 0 : index
    %c0_28 = arith.constant 0 : index
    %26 = vector.load %arg6[%c0_26, %c0_27, %c0_28] : memref<1x56x896xf32, #tpu.memory_space<vmem>>, vector<1x56x896xf32>
    %27 = vector.shape_cast %26 : vector<1x56x896xf32> to vector<56x896xf32>
    %28 = vector.shape_cast %25 : vector<56x896xf32> to vector<1x56x896xf32>
    tpu.vector_store %arg6[%c0_26, %c0_27, %c0_28], %28 {strides = array<i32>} : memref<1x56x896xf32, #tpu.memory_space<vmem>>, vector<1x56x896xf32>,
    return
  }
  func.func @transform_0(%arg0: i32) -> (i32, i32, i32) {
    %c0_i32 = arith.constant 0 : i32
    %c0_i32_0 = arith.constant 0 : i32
    %c0_i32_1 = arith.constant 0 : i32
    return %arg0, %c0_i32, %c0_i32_0 : i32, i32, i32
  }
  func.func @transform_1(%arg0: i32) -> (i32, i32, i32) {
    %c0_i32 = arith.constant 0 : i32
    %c0_i32_0 = arith.constant 0 : i32
    %c0_i32_1 = arith.constant 0 : i32
    %c0_i32_2 = arith.constant 0 : i32
    return %c0_i32, %c0_i32_0, %c0_i32_1 : i32, i32, i32
  }
  func.func @transform_2(%arg0: i32) -> (i32, i32) {
    %c0_i32 = arith.constant 0 : i32
    %c0_i32_0 = arith.constant 0 : i32
    %c0_i32_1 = arith.constant 0 : i32
    return %c0_i32, %c0_i32_0 : i32, i32
  }
  func.func @transform_3(%arg0: i32) -> (i32, i32) {
    %c0_i32 = arith.constant 0 : i32
    %c0_i32_0 = arith.constant 0 : i32
    %c0_i32_1 = arith.constant 0 : i32
    return %c0_i32, %c0_i32_0 : i32, i32
  }
  func.func @transform_4(%arg0: i32) -> (i32, i32) {
    %c0_i32 = arith.constant 0 : i32
    %c0_i32_0 = arith.constant 0 : i32
    %c0_i32_1 = arith.constant 0 : i32
    return %c0_i32, %c0_i32_0 : i32, i32
  }
  func.func @transform_5(%arg0: i32) -> (i32, i32, i32) {
    %c0_i32 = arith.constant 0 : i32
    %c0_i32_0 = arith.constant 0 : i32
    %c0_i32_1 = arith.constant 0 : i32
    return %arg0, %c0_i32, %c0_i32_0 : i32, i32, i32
  }
}

</mosaic_0001>

<bundles_post_ra>
// kernel: tpu_custom_call.1
= control target key start
LH: loop header
LB: loop body
LE: loop exit
PB: predicated region body
PF: predicated region fallthrough
CT: control target
= control target key end

     0   :  { %10 = vsyncpa [#allocation3], 0  ;;  %s2971_s0 = inlined_call_operand.vmem [shape: f32[2,16,160], index: 0, kind: input, shape index: {}]   ;;  %s2972_s1 = inlined_call_operand.hbm [shape: f32[3,160,224], index: 1, kind: input, shape index: {}]   ;;  %s2973_s2 = inlined_call_operand.vmem [shape: f32[1,224], index: 2, kind: input, shape index: {}]   ;;  %s2974_s3 = inlined_call_operand.hbm [shape: f32[224,896], index: 3, kind: input, shape index: {}]   ;;  %s2975_s4 = inlined_call_operand.vmem [shape: f32[56,14], index: 4, kind: input, shape index: {}]   ;;  %s2976_s5 = inlined_call_operand.hbm [shape: f32[2,56,896], index: 5, kind: output, shape index: {}]  }
   0x1   :  { %11 = vsyncpa [#allocation6], 0 }
   0x2   :  { %12 = vsyncpa [#allocation4], 0 }
   0x3   :  { %14 = vsyncpa [#allocation4 + $0x1], 0  ;;  %s2508_s18 = smov 0   ;;  %s2510_s19 = smov 0  }
   0x4   :  { %s2512_s20 = smov 0   ;;  %s2514_s21 = smov 0  }
   0x5 LB: > { %s2529_s22 = sadd.s32 4294967295, %s2463_s21   ;;  %s1806_s23 = sadd.s32 4294967294, %s2463_s21   ;;  %s2463_s21 = sphi %s2514_s21, %s2996_s21   ;;  %s2459_s20 = sphi %s2512_s20, %s2995_s20   ;;  %s2455_s19 = sphi %s2510_s19, %s2994_s19   ;;  %s2451_s18 = sphi %s2508_s18, %s2993_s18  }
   0x6   : > { %s2533_s24 = sadd.s32 1, %s2463_s21   ;;  %s137_s25 = sadd.s32 1, %s2459_s20 }
   0x7   : > { %s134_s26 = ssub.s32 %s2463_s21, %s2533_s24  ;;  %p147_p0 = scmp.ne.s32.totalorder %s2459_s20, %s2455_s19 }
   0x8   : > { %p135_p1 = scmp.eq.s32.totalorder %s134_s26, 0  ;;  %p148_p2 = scmp.eq.s32.totalorder %s2529_s22, 1 }
   0x9   : > { %p153_p3 = scmp.ne.s32.totalorder %s2455_s19, %s2451_s18  ;;  %p154_p4 = scmp.eq.s32.totalorder %s1806_s23, 1 }
   0xa   : > { %s2544_s27 = scalar_select %p135_p1, %s2459_s20, %s137_s25  }
   0xb   : > { %p2546_p5 = por %p148_p2, %p147_p0  ;;  %p2550_p6 = por %p154_p4, %p153_p3 }
   0xc   : > { %p1807_p7 = scmp.ge.s32.totalorder %s2463_s21, 1  ;;  %p161_p8 = scmp.lt.s32.totalorder %s2463_s21, 3 }
   0xd   : > { %s2980_s28 = scalar_select %p2546_p5, 1, 0 }
   0xe   : > { %s2981_s29 = scalar_select %p2550_p6, 1, 0 }
   0xf   : > { %p2977_p9 = scmp.eq.s32.totalorder %s2529_s22, 0  ;;  %p2557_p10 = pnand %p1807_p7, %p161_p8 }
  0x10   : > { %s2465_s6 = smov [#allocation2]   ;;  %s2466_s9 = smov [#allocation5]  }
  0x11   : > { %s2982_s30 = scalar_select %p2557_p10, 1, 0 }
  0x12   : > { %s173_s7 = sshll.u32 %s2465_s6, 4  ;;  %p2277_p11 = pneg %p2557_p10  ;;  %s174_s7 = int_to_ptr.vmem [resolvable:$true] %s173_s7 }
  0x13   : > { %s189_s10 = sshll.u32 %s2466_s9, 4  ;;  %s2337_s13 = scalar_lea.hbm %s2972_s1, 15360  ;;  %s2569_s10 = int_to_ptr.vmem [resolvable:$true] %s189_s10 }
  0x14   : > { %p2565_p12 = pnand %p2977_p9, %p2277_p11  ;;  %p2338_p13 = scmp.ne.s32.totalorder %s2972_s1, %s2337_s13 }
  0x15   : > { %p2344_p3 = scmp.lt.u32.totalorder %s2337_s13, %s2972_s1 }
  0x16   : > { %p2339_p0 = pneg %p2565_p12 }
  0x18   : > { %p2340_p1 = pnand %p2339_p0, %p2338_p13 }
  0x1a   : > { %p2341_p2 = pneg %p2340_p1 }
  0x1c   : > { %p2346_p4 = pnand %p2344_p3, %p2341_p2 }
  0x1e   : > { %2349 = shalt.err (!%p2346_p4)
}
  0x1f   : > { %s2350_s23 = scalar_lea.vmem %s174_s7, 15360  ;;  %p2358_p9 = scmp.lt.s32.totalorder %s174_s7, %s174_s7 }
  0x20   : > { %p2351_p7 = scmp.ne.s32.totalorder %s174_s7, %s2350_s23  ;;  %p2359_p6 = scmp.lt.s32.totalorder %s2350_s23, %s2350_s23 }
  0x22   : > { %p2353_p8 = pnand %p2351_p7, %p2339_p0  ;;  %p2360_p5 = por %p2359_p6, %p2358_p9 }
  0x24   : > { %p2354_p11 = pneg %p2353_p8 }
  0x26   : > { %p2361_p10 = pnand %p2360_p5, %p2354_p11 }
  0x28   : > { %2364 = shalt.err (!%p2361_p10)
}
  0x29   : > { %s2467_s25 = smov 256   ;;  %s2468_s26 = smov 16  }
  0x2a   : > { %2280 = dma.hbm_to_vmem [thread:$0]  (!%p2565_p12), %s2972_s1, 15360, %s174_s7, [#allocation3], %s2467_s25, %s2467_s25, %s2468_s26  }
  0x2b   : > { %s2365_s13 = scalar_lea.hbm %s2974_s3, 25088 }
  0x2c   : > { %p2366_p13 = scmp.ne.s32.totalorder %s2974_s3, %s2365_s13  ;;  %p2372_p9 = scmp.lt.u32.totalorder %s2365_s13, %s2974_s3 }
  0x2e   : > { %p2368_p5 = pnand %p2366_p13, %p2339_p0 }
  0x30   : > { %p2369_p6 = pneg %p2368_p5 }
  0x32   : > { %p2374_p10 = pnand %p2372_p9, %p2369_p6 }
  0x34   : > { %2377 = shalt.err (!%p2374_p10)
}
  0x35   : > { %s2378_s7 = scalar_lea.vmem %s2569_s10, 25088  ;;  %p2386_p4 = scmp.lt.s32.totalorder %s2569_s10, %s2569_s10 }
  0x36   : > { %p2379_p1 = scmp.ne.s32.totalorder %s2569_s10, %s2378_s7  ;;  %p2387_p7 = scmp.lt.s32.totalorder %s2378_s7, %s2378_s7 }
  0x38   : > { %p2381_p2 = pnand %p2379_p1, %p2339_p0  ;;  %p2388_p8 = por %p2387_p7, %p2386_p4 }
  0x3a   : > { %p2382_p3 = pneg %p2381_p2 }
  0x3c   : > { %p2389_p11 = pnand %p2388_p8, %p2382_p3 }
  0x3e   : > { %2392 = shalt.err (!%p2389_p11)
}
  0x3f   : > { %s2469_s23 = smov 896   ;;  %s2470_s25 = smov 56  }
  0x40   : > { %2283 = dma.hbm_to_vmem [thread:$0]  (!%p2565_p12), %s2974_s3, 25088, %s2569_s10, [#allocation6], %s2469_s23, %s2469_s23, %s2470_s25  }
  0x41   : > { %p2984_p13 = scmp.ne.s32.totalorder %s2982_s30, 0 }
  0x42   : > { %p2985_p0 = scmp.eq.s32.totalorder (!%p2984_p13), %s2529_s22, 0 }
  0x43   : > { %216 = sbr.rel (%p2984_p13) target bundleno = 1004 (0x3ec), region = 40 }
  0x4a   : > { %2438 = dma.done.wait (%p2985_p0), [#allocation3], 15360   ;;  %p2986_p5 = pmov %p2985_p0 }
  0x4b   : > { %p2987_p6 = pmov %p2985_p0 }
  0x4c   : > { %2440 = vsyncadd (%p2986_p5), [#allocation3], 4294951936 }
  0x4d   : > { %2442 = dma.done.wait (%p2987_p6), [#allocation6], 25088   ;;  %p2988_p9 = pmov %p2985_p0 }
  0x4e   : > { %p248_p10 = scmp.lt.s32.totalorder %s2529_s22, 1  ;;  %v303_v0 = vld [vmem:[#allocation2 + $0x148] sm:$0xff]  ;;  %v305_v1 = vld [vmem:[#allocation2 + $0x158] sm:$0xff]  ;;  %v302_v2 = vld [vmem:[#allocation2 + $0x140] sm:$0xff]  ;;  %vm346_vm0 = vcmask 1046528   ;;  %vm355_vm1 = vcmask 261120  }
  0x4f   : > { %2444 = vsyncadd (%p2988_p9), [#allocation6], 4294942208  ;;  %v1903_v3 = vpack.c.bf16 %v305_v1, %v303_v0  ;;  %v304_v4 = vld [vmem:[#allocation2 + $0x150] sm:$0xff]  ;;  %v307_v5 = vld [vmem:[#allocation2 + $0x168] sm:$0xff]  ;;  %vm569_vm2 = vcmask 1045504   ;;  %vm875_vm3 = vcmask 785408  }
  0x50   : > { %v309_v6 = vld [vmem:[#allocation2 + $0x178] sm:$0xff]  ;;  %v1905_v7 = vpack.c.bf16 %v304_v4, %v302_v2  ;;  %v306_v9 = vld [vmem:[#allocation2 + $0x160] sm:$0xff]  ;;  %v308_v10 = vld [vmem:[#allocation2 + $0x170] sm:$0xff]  ;;  %s249_s30 = scalar_select %p248_p10, %s2529_s22, 1  ;;  %vm2473_vm4 = vmmov 1   ;;  %vm1195_vm6 = vcmask 113664  }
  0x51   : > { %v1907_v8 = vpack.c.bf16 %v309_v6, %v307_v5  ;;  %v311_v11 = vld [vmem:[#allocation2 + $0x188] sm:$0xff]  ;;  %1904 = vmatprep.subr.bf16.mxu0 %v1903_v3  ;;  %v313_v12 = vld [vmem:[#allocation2 + $0x198] sm:$0xff]  ;;  %v1909_v13 = vpack.c.bf16 %v308_v10, %v306_v9  ;;  %v310_v15 = vld [vmem:[#allocation2 + $0x180] sm:$0xff]  ;;  %vm2474_vm7 = vmmov 0   ;;  %s245_s12 = sand.u32 1, %s2455_s19   ;;  %s2266_s15 = smul.u32 6272, %s2529_s22 }
  0x52   : > { %1906 = vmatpush1.bf16.msra.mxu0 %v1905_v7  ;;  %v1911_v14 = vpack.c.bf16 %v313_v12, %v311_v11  ;;  %v312_v16 = vld [vmem:[#allocation2 + $0x190] sm:$0xff]  ;;  %v315_v17 = vld [vmem:[#allocation2 + $0x1a8] sm:$0xff]  ;;  %v317_v18 = vld [vmem:[#allocation2 + $0x1b8] sm:$0xff]  ;;  %s1868_s8 = sshll.u32 %s249_s30, 5  ;;  %s2265_s13 = smul.u32 392, %s245_s12 }
  0x53   : > { %1908 = vmatprep.subr.bf16.mxu0 %v1907_v8  ;;  %v1913_v19 = vpack.c.bf16 %v312_v16, %v310_v15  ;;  %v1915_v20 = vpack.c.bf16 %v317_v18, %v315_v17  ;;  %v314_v21 = vld [vmem:[#allocation2 + $0x1a0] sm:$0xff]  ;;  %v316_v22 = vld [vmem:[#allocation2 + $0x1b0] sm:$0xff]  ;;  %v319_v23 = vld [vmem:[#allocation2 + $0x1c8] sm:$0xff]  ;;  %s2635_s11 = scalar_lea.vmem %s2971_s0, %s1868_s8  ;;  %s2922_s23 = scalar_lea.hbm %s2976_s5, %s2266_s15 }
  0x54   : > { %v321_v24 = vld [vmem:[#allocation2 + $0x1d8] sm:$0xff]  ;;  %v1917_v25 = vpack.c.bf16 %v316_v22, %v314_v21  ;;  %v318_v26 = vld [vmem:[#allocation2 + $0x1c0] sm:$0xff]  ;;  %v320_v28 = vld [vmem:[#allocation2 + $0x1d0] sm:$0xff]  ;;  %s2868_s14 = scalar_lea.vmem [#allocation7], %s2265_s13  ;;  %s2930_s22 = scalar_lea.sflag [#allocation4], %s245_s12 }
  0x55   : > { %v1919_v27 = vpack.c.bf16 %v321_v24, %v319_v23  ;;  %v298_v29 = vld [vmem:[%s2635_s11 + $0x8] sm:$0xfe]  ;;  %v2639_v30 = vld [vmem:[%s2635_s11 + $0x18] sm:$0x7f]  ;;  %v1921_v35 = vpack.c.bf16 %v320_v28, %v318_v26  ;;  %v322_v38 = vld [vmem:[#allocation2 + $0x1e0] sm:$0xff]  ;;  %s1722_s16 = sshll.u32 %s2868_s14, 4  ;;  %s2924_s16 = int_to_ptr.vmem [resolvable:$true] %s1722_s16 }
  0x56   : > { %1910 = vmatpush1.bf16.msra.mxu0 %v1909_v13  ;;  %v323_v31 = vld [vmem:[#allocation2 + $0x1e8] sm:$0xff]  ;;  %v325_v32 = vld [vmem:[#allocation2 + $0x1f8] sm:$0xff]  ;;  %v350_v33 = vrot.slane %v298_v29, 1  ;;  %v351_v34 = vrot.slane %v2639_v30, 1  ;;  %v324_v39 = vld [vmem:[#allocation2 + $0x1f0] sm:$0xff]  ;;  %s2393_s25 = scalar_lea.vmem %s2924_s16, 6272 }
  0x57   : > { %1912 = vmatprep.subr.bf16.mxu0 %v1911_v14  ;;  %v1923_v37 = vpack.c.bf16 %v325_v32, %v323_v31  ;;  %v327_v40 = vld [vmem:[#allocation2 + $0x208] sm:$0xff]  ;;  %v329_v41 = vld [vmem:[#allocation2 + $0x218] sm:$0xff]  ;;  %v1925_v42 = vpack.c.bf16 %v324_v39, %v322_v38  ;;  %v326_v44 = vld [vmem:[#allocation2 + $0x200] sm:$0xff]  ;;  %p2394_p12 = scmp.ne.s32.totalorder %s2924_s16, %s2393_s25  ;;  %p2991_p1 = scmp.ne.s32.totalorder %s2980_s28, 0 }
  0x58   : > { %v352_v36 = vsel %vm346_vm0, %v350_v33, %v351_v34  ;;  %v1927_v43 = vpack.c.bf16 %v329_v41, %v327_v40  ;;  %v328_v45 = vld [vmem:[#allocation2 + $0x210] sm:$0xff]  ;;  %v331_v46 = vld [vmem:[#allocation2 + $0x228] sm:$0xff]  ;;  %v333_v47 = vld [vmem:[#allocation2 + $0x238] sm:$0xff]  ;;  %s2475_s26 = smov [#allocation7]  }
  0x59   : > { %1816 = vmatprep.mubr.msk.f32.mxu0 %vm355_vm1, %v352_v36  ;;  %v1929_v48 = vpack.c.bf16 %v328_v45, %v326_v44  ;;  %v1931_v49 = vpack.c.bf16 %v333_v47, %v331_v46  ;;  %v330_v50 = vld [vmem:[#allocation2 + $0x220] sm:$0xff]  ;;  %v332_v51 = vld [vmem:[#allocation2 + $0x230] sm:$0xff]  ;;  %v335_v52 = vld [vmem:[#allocation2 + $0x248] sm:$0xff]  ;;  %p2395_p2 = pnand %p2394_p12, %p2991_p1  ;;  %s2397_s6 = sshll.u32 %s2475_s26, 4  ;;  %s2398_s6 = int_to_ptr.vmem [resolvable:$false] %s2397_s6 }
  0x5a   : > { %1914 = vmatpush1.bf16.msra.mxu0 %v1913_v19  ;;  %v337_v53 = vld [vmem:[#allocation2 + $0x258] sm:$0xff]  ;;  %v1933_v54 = vpack.c.bf16 %v332_v51, %v330_v50  ;;  %v334_v56 = vld [vmem:[#allocation2 + $0x240] sm:$0xff]  ;;  %v336_v57 = vld [vmem:[#allocation2 + $0x250] sm:$0xff]  ;;  %s2399_s30 = scalar_lea.vmem %s2398_s6, 12544  ;;  %p2400_p4 = scmp.lt.s32.totalorder %s2924_s16, %s2398_s6 }
  0x5b   : > { %1916 = vmatprep.subr.bf16.mxu0 %v1915_v20  ;;  %v1935_v55 = vpack.c.bf16 %v337_v53, %v335_v52  ;;  %v339_v58 = vld [vmem:[#allocation2 + $0x268] sm:$0xff]  ;;  %v341_v59 = vld [vmem:[#allocation2 + $0x278] sm:$0xff]  ;;  %v1937_v60 = vpack.c.bf16 %v336_v57, %v334_v56  ;;  %v338_v61 = vld [vmem:[#allocation2 + $0x260] sm:$0xff]  ;;  %p2396_p3 = pneg %p2395_p2  ;;  %p2401_p7 = scmp.lt.s32.totalorder %s2399_s30, %s2393_s25 }
  0x5c   : > { %v1939_v62 = vpack.c.bf16 %v341_v59, %v339_v58  ;;  %v340_v63 = vld [vmem:[#allocation2 + $0x270] sm:$0xff]  ;;  %v297_v0 = vld [vmem:[%s2635_s11] sm:$0xfe]  ;;  %v258_v2 = vld [vmem:[#allocation2 + $0x8] sm:$0xff] }
  0x5d   : > { %v299_v1 = vld [vmem:[%s2635_s11 + $0x10] sm:$0x7f]  ;;  %v260_v3 = vld [vmem:[#allocation2 + $0x18] sm:$0xff]  ;;  %v1941_v4 = vpack.c.bf16 %v340_v63, %v338_v61  ;;  %v347_v5 = vrot.slane %v297_v0, 1  ;;  %v257_v8 = vld [vmem:[#allocation2] sm:$0xff]  ;;  %p2402_p8 = por %p2401_p7, %p2400_p4 }
  0x5e   : > { %1918 = vmatpush1.bf16.msra.mxu0 %v1917_v25  ;;  %v348_v6 = vrot.slane %v299_v1, 1  ;;  %v1943_v7 = vpack.c.bf16 %v260_v3, %v258_v2  ;;  %v259_v9 = vld [vmem:[#allocation2 + $0x10] sm:$0xff]  ;;  %v262_v10 = vld [vmem:[#allocation2 + $0x28] sm:$0xff]  ;;  %v264_v11 = vld [vmem:[#allocation2 + $0x38] sm:$0xff] }
  0x5f   : > { %1920 = vmatprep.subr.bf16.mxu0 %v1919_v27  ;;  %v1945_v13 = vpack.c.bf16 %v259_v9, %v257_v8  ;;  %v1947_v14 = vpack.c.bf16 %v264_v11, %v262_v10  ;;  %v261_v15 = vld [vmem:[#allocation2 + $0x20] sm:$0xff]  ;;  %v263_v16 = vld [vmem:[#allocation2 + $0x30] sm:$0xff]  ;;  %v266_v17 = vld [vmem:[#allocation2 + $0x48] sm:$0xff]  ;;  %p2403_p11 = pnand %p2402_p8, %p2396_p3 }
  0x60   : > { %v349_v12 = vsel %vm346_vm0, %v347_v5, %v348_v6  ;;  %v268_v18 = vld [vmem:[#allocation2 + $0x58] sm:$0xff]  ;;  %v265_v19 = vld [vmem:[#allocation2 + $0x40] sm:$0xff]  ;;  %v267_v20 = vld [vmem:[#allocation2 + $0x50] sm:$0xff]  ;;  %v1949_v21 = vpack.c.bf16 %v263_v16, %v261_v15 }
  0x61   : > { %v270_v22 = vld [vmem:[#allocation2 + $0x68] sm:$0xff]  ;;  %v687_v24 = vld [vmem:[#allocation5 + $0x40] sm:$0xff]  ;;  %v1951_v26 = vpack.c.bf16 %v268_v18, %v266_v17  ;;  %v272_v27 = vld [vmem:[#allocation2 + $0x78] sm:$0xff]  ;;  %v1953_v30 = vpack.c.bf16 %v267_v20, %v265_v19 }
  0x62   : > { %1922 = vmatpush1.bf16.msra.mxu0 %v1921_v35  ;;  %v680_v23 = vld [vmem:[#allocation5 + $0x8] sm:$0xff]  ;;  %v679_v25 = vld [vmem:[#allocation5] sm:$0xff]  ;;  %v686_v31 = vld [vmem:[#allocation5 + $0x38] sm:$0xff]  ;;  %v1955_v40 = vpack.c.bf16 %v272_v27, %v270_v22 }
  0x63   : > { %1924 = vmatprep.subr.bf16.mxu0 %v1923_v37  ;;  %v254_v28 = vld [vmem:[%s2635_s11 + $0x8] sm:$0xff]  ;;  %v2023_v29 = vpack.c.bf16 %v687_v24, %v680_v23  ;;  %v2025_v32 = vpack.c.bf16 %v686_v31, %v679_v25  ;;  %v694_v33 = vld [vmem:[#allocation5 + $0x78] sm:$0xff]  ;;  %v701_v35 = vld [vmem:[#allocation5 + $0xb0] sm:$0xff] }
  0x64   : > { %v693_v36 = vld [vmem:[#allocation5 + $0x70] sm:$0xff]  ;;  %v2027_v37 = vpack.c.bf16 %v701_v35, %v694_v33  ;;  %v700_v38 = vld [vmem:[#allocation5 + $0xa8] sm:$0xff]  ;;  %v715_v39 = vld [vmem:[#allocation5 + $0x120] sm:$0xff] }
  0x65   : > { %2024 = vmatprep.subr.bf16.mxu1 %v2023_v29  ;;  %v269_v41 = vld [vmem:[#allocation2 + $0x60] sm:$0xff]  ;;  %v2029_v44 = vpack.c.bf16 %v700_v38, %v693_v36  ;;  %v276_v45 = vld [vmem:[#allocation2 + $0x98] sm:$0xff]  ;;  %v729_v50 = vld [vmem:[#allocation5 + $0x190] sm:$0xff] }
  0x66   : > { %1926 = vmatpush1.bf16.msra.mxu0 %v1925_v42  ;;  %v271_v42 = vld [vmem:[#allocation2 + $0x70] sm:$0xff]  ;;  %2026 = vmatpush1.bf16.msra.mxu1 %v2025_v32  ;;  %v707_v47 = vld [vmem:[#allocation5 + $0xe0] sm:$0xff]  ;;  %v280_v57 = vld [vmem:[#allocation2 + $0xb8] sm:$0xff] }
  0x67   : > { %1928 = vmatprep.subr.bf16.mxu0 %v1927_v43  ;;  %v274_v43 = vld [vmem:[#allocation2 + $0x88] sm:$0xff]  ;;  %2028 = vmatprep.subr.bf16.mxu1 %v2027_v37  ;;  %v1957_v51 = vpack.c.bf16 %v271_v42, %v269_v41  ;;  %v273_v53 = vld [vmem:[#allocation2 + $0x80] sm:$0xff]  ;;  %v721_v59 = vld [vmem:[#allocation5 + $0x150] sm:$0xff] }
  0x68   : > { %v1959_v52 = vpack.c.bf16 %v276_v45, %v274_v43  ;;  %v736_v61 = vld [vmem:[#allocation5 + $0x1c8] sm:$0xff]  ;;  %v277_v1 = vld [vmem:[#allocation2 + $0xa0] sm:$0xff]  ;;  %v279_v2 = vld [vmem:[#allocation2 + $0xb0] sm:$0xff] }
  0x69   : > { %v282_v3 = vld [vmem:[#allocation2 + $0xc8] sm:$0xff]  ;;  %v284_v5 = vld [vmem:[#allocation2 + $0xd8] sm:$0xff]  ;;  %v757_v10 = vld [vmem:[#allocation5 + $0x270] sm:$0xff]  ;;  %v1965_v11 = vpack.c.bf16 %v279_v2, %v277_v1 }
  0x6a   : > { %1930 = vmatpush1.bf16.msra.mxu0 %v1929_v48  ;;  %v714_v48 = vld [vmem:[#allocation5 + $0x118] sm:$0xff]  ;;  %2030 = vmatpush1.bf16.msra.mxu1 %v2029_v44  ;;  %v286_v15 = vld [vmem:[#allocation2 + $0xe8] sm:$0xff]  ;;  %v749_v19 = vld [vmem:[#allocation5 + $0x230] sm:$0xff] }
  0x6b   : > { %1932 = vmatprep.subr.bf16.mxu0 %v1931_v49  ;;  %v722_v49 = vld [vmem:[#allocation5 + $0x158] sm:$0xff]  ;;  %v2033_v56 = vpack.c.bf16 %v714_v48, %v707_v47  ;;  %v756_v20 = vld [vmem:[#allocation5 + $0x268] sm:$0xff]  ;;  %v771_v22 = vld [vmem:[#allocation5 + $0x2e0] sm:$0xff] }
  0x6c   : > { %v2035_v58 = vpack.c.bf16 %v729_v50, %v722_v49  ;;  %v742_v8 = vld [vmem:[#allocation5 + $0x1f8] sm:$0xff]  ;;  %v285_v25 = vld [vmem:[#allocation2 + $0xe0] sm:$0xff]  ;;  %v290_v27 = vld [vmem:[#allocation2 + $0x108] sm:$0xff] }
  0x6d   : > { %v750_v9 = vld [vmem:[#allocation5 + $0x238] sm:$0xff]  ;;  %v763_v32 = vld [vmem:[#allocation5 + $0x2a0] sm:$0xff]  ;;  %v785_v36 = vld [vmem:[#allocation5 + $0x350] sm:$0xff] }
  0x6e   : > { %1934 = vmatpush1.bf16.msra.mxu0 %v1933_v54  ;;  %v275_v54 = vld [vmem:[#allocation2 + $0x90] sm:$0xff]  ;;  %v288_v17 = vld [vmem:[#allocation2 + $0xf8] sm:$0xff]  ;;  %v2043_v18 = vpack.c.bf16 %v757_v10, %v750_v9  ;;  %v784_v44 = vld [vmem:[#allocation5 + $0x348] sm:$0xff] }
  0x6f   : > { %1936 = vmatprep.subr.bf16.mxu0 %v1935_v55  ;;  %v278_v55 = vld [vmem:[#allocation2 + $0xa8] sm:$0xff]  ;;  %v1961_v63 = vpack.c.bf16 %v275_v54, %v273_v53  ;;  %v1971_v24 = vpack.c.bf16 %v288_v17, %v286_v15  ;;  %v292_v29 = vld [vmem:[#allocation2 + $0x118] sm:$0xff]  ;;  %v777_v43 = vld [vmem:[#allocation5 + $0x310] sm:$0xff] }
  0x70   : > { %v1963_v0 = vpack.c.bf16 %v280_v57, %v278_v55  ;;  %v770_v33 = vld [vmem:[#allocation5 + $0x2d8] sm:$0xff]  ;;  %v1975_v38 = vpack.c.bf16 %v292_v29, %v290_v27  ;;  %v792_v45 = vld [vmem:[#allocation5 + $0x388] sm:$0xff]  ;;  %v293_v49 = vld [vmem:[#allocation2 + $0x120] sm:$0xff] }
  0x71   : > { %v778_v35 = vld [vmem:[#allocation5 + $0x318] sm:$0xff]  ;;  %v295_v50 = vld [vmem:[#allocation2 + $0x130] sm:$0xff]  ;;  %v791_v55 = vld [vmem:[#allocation5 + $0x380] sm:$0xff] }
  0x72   : > { %1938 = vmatpush1.bf16.msra.mxu0 %v1937_v60  ;;  %v728_v60 = vld [vmem:[#allocation5 + $0x188] sm:$0xff]  ;;  %v296_v41 = vld [vmem:[#allocation2 + $0x138] sm:$0xff]  ;;  %v2051_v42 = vpack.c.bf16 %v785_v36, %v778_v35  ;;  %v253_v9 = vld [vmem:[%s2635_s11] sm:$0xff] }
  0x73   : > { %1940 = vmatprep.subr.bf16.mxu0 %v1939_v62  ;;  %v743_v62 = vld [vmem:[#allocation5 + $0x200] sm:$0xff]  ;;  %v528_v53 = vld [vmem:[#allocation2 + $0x298] sm:$0xff]  ;;  %v521_v1 = vld [vmem:[%s2635_s11 + $0x8] sm:$0xfc] }
  0x74   : > { %v806_v57 = vld [vmem:[#allocation5 + $0x3f8] sm:$0xff]  ;;  %v535_v29 = vld [vmem:[#allocation2 + $0x2d0] sm:$0xff]  ;;  %vm2725_vm5 = vmpackc.low %vm569_vm2, %vm2473_vm4 }
  0x75   : > { %v256_v15 = vld [vmem:[%s2635_s11 + $0x18] sm:$0x3f] }
  0x76   : > { %1942 = vmatpush1.bf16.msra.mxu0 %v1941_v4  ;;  %v2037_v4 = vpack.c.bf16 %v728_v60, %v721_v59  ;;  %v1981_v59 = vpack.c.bf16 %v295_v50, %v293_v49  ;;  %v525_v60 = vld [vmem:[#allocation2 + $0x280] sm:$0xff]  ;;  %v540_v35 = vld [vmem:[#allocation2 + $0x2f8] sm:$0xff] }
  0x77   : > { %1944 = vmatprep.subr.bf16.mxu0 %v1943_v7  ;;  %v735_v7 = vld [vmem:[#allocation5 + $0x1c0] sm:$0xff] }
  0x78   : > { %v2041_v16 = vpack.c.bf16 %v742_v8, %v735_v7  ;;  %v820_v7 = vld [vmem:[#allocation5 + $0x468] sm:$0xff]  ;;  %v827_v8 = vld [vmem:[#allocation5 + $0x4a0] sm:$0xff] }
  0x79   : > { %425 = vmatmul.mubr.f32.vlgmr.msra.gmra.mrb[0].mxu0 %v349_v12  ;;  %v1967_v12 = vpack.c.bf16 %v284_v5, %v282_v3  ;;  %v2656_v3 = vld [vmem:[%s2635_s11 + $0x18] sm:$0xff]  ;;  %v805_v5 = vld [vmem:[#allocation5 + $0x3f0] sm:$0xff] }
  0x7a   : > { %1946 = vmatpush1.bf16.msra.mxu0 %v1945_v13  ;;  %1817 = vmatprep.mubr.msk.f32.mxu0 %vm355_vm1, %v351_v34  ;;  %v708_v34 = vld [vmem:[#allocation5 + $0xe8] sm:$0xff]  ;;  %v281_v13 = vld [vmem:[#allocation2 + $0xc0] sm:$0xff]  ;;  %v574_v17 = vrot.slane %v2656_v3, 2  ;;  %v741_v3 = vld [vmem:[#allocation5 + $0x1f0] sm:$0xff] }
  0x7b   : > { %1948 = vmatprep.subr.bf16.mxu0 %v1947_v14  ;;  %v2031_v46 = vpack.c.bf16 %v715_v39, %v708_v34  ;;  %v283_v14 = vld [vmem:[#allocation2 + $0xd0] sm:$0xff]  ;;  %v294_v39 = vld [vmem:[#allocation2 + $0x128] sm:$0xff] }
  0x7c   : > { %v1969_v23 = vpack.c.bf16 %v283_v14, %v281_v13  ;;  %v291_v34 = vld [vmem:[#allocation2 + $0x110] sm:$0xff]  ;;  %v1979_v48 = vpack.c.bf16 %v296_v41, %v294_v39  ;;  %v534_v14 = vld [vmem:[#allocation2 + $0x2c8] sm:$0xff]  ;;  %v537_v41 = vld [vmem:[#allocation2 + $0x2e0] sm:$0xff] }
  0x7d   : > { %431 = vmatmul.mubr.f32.gmra.mrb[2].mxu0 %v348_v6  ;;  %2032 = vmatprep.subr.bf16.mxu1 %v2031_v46  ;;  %v2039_v6 = vpack.c.bf16 %v743_v62, %v736_v61  ;;  %v799_v46 = vld [vmem:[#allocation5 + $0x3c0] sm:$0xff]  ;;  %v527_v61 = vld [vmem:[#allocation2 + $0x290] sm:$0xff] }
  0x7e   : > { %1950 = vmatpush1.bf16.msra.mxu0 %v1949_v21  ;;  %1818 = vmatprep.mubr.msk.f32.mxu0 %vm355_vm1, %v254_v28  ;;  %v764_v21 = vld [vmem:[#allocation5 + $0x2a8] sm:$0xff]  ;;  %v2045_v28 = vpack.c.bf16 %v756_v20, %v749_v19  ;;  %v2055_v54 = vpack.c.bf16 %v799_v46, %v792_v45  ;;  %v1985_v10 = vpack.c.bf16 %v527_v61, %v525_v60  ;;  %v531_v13 = vld [vmem:[#allocation2 + $0x2b0] sm:$0xff]  ;;  %v536_v19 = vld [vmem:[#allocation2 + $0x2d8] sm:$0xff] }
  0x7f   : > { %1952 = vmatprep.subr.bf16.mxu0 %v1951_v26  ;;  %2034 = vmatpush1.bf16.msra.mxu1 %v2033_v56  ;;  %v287_v26 = vld [vmem:[#allocation2 + $0xf0] sm:$0xff]  ;;  %v2047_v31 = vpack.c.bf16 %v771_v22, %v764_v21  ;;  %v798_v56 = vld [vmem:[#allocation5 + $0x3b8] sm:$0xff]  ;;  %v2063_v20 = vpack.c.bf16 %v827_v8, %v820_v7  ;;  %v819_v21 = vld [vmem:[#allocation5 + $0x460] sm:$0xff]  ;;  %v1991_v27 = vpack.c.bf16 %v536_v19, %v534_v14 }
  0x80   : > { %2036 = vmatprep.subr.bf16.mxu1 %v2035_v58  ;;  %v1973_v37 = vpack.c.bf16 %v287_v26, %v285_v25  ;;  %v813_v58 = vld [vmem:[#allocation5 + $0x430] sm:$0xff]  ;;  %v2057_v2 = vpack.c.bf16 %v798_v56, %v791_v55  ;;  %v826_v22 = vld [vmem:[#allocation5 + $0x498] sm:$0xff]  ;;  %v550_v60 = vld [vmem:[#allocation2 + $0x348] sm:$0xff] }
  0x81   : > { %v255_v26 = vld [vmem:[%s2635_s11 + $0x10] sm:$0x3f]  ;;  %v544_v45 = vld [vmem:[#allocation2 + $0x318] sm:$0xff]  ;;  %v553_v7 = vld [vmem:[#allocation2 + $0x360] sm:$0xff] }
  0x82   : > { %1954 = vmatpush1.bf16.msra.mxu0 %v1953_v30  ;;  %v289_v30 = vld [vmem:[#allocation2 + $0x100] sm:$0xff]  ;;  %v548_v55 = vld [vmem:[#allocation2 + $0x338] sm:$0xff]  ;;  %v555_v8 = vld [vmem:[#allocation2 + $0x370] sm:$0xff] }
  0x83   : > { %1956 = vmatprep.subr.bf16.mxu0 %v1955_v40  ;;  %2038 = vmatpush1.bf16.msra.mxu1 %v2037_v4  ;;  %v2049_v40 = vpack.c.bf16 %v770_v33, %v763_v32  ;;  %v1977_v47 = vpack.c.bf16 %v291_v34, %v289_v30  ;;  %v2059_v4 = vpack.c.bf16 %v813_v58, %v806_v57  ;;  %v848_v30 = vld [vmem:[#allocation5 + $0x548] sm:$0xff]  ;;  %v855_v34 = vld [vmem:[#allocation5 + $0x580] sm:$0xff]  ;;  %v552_v61 = vld [vmem:[#allocation2 + $0x358] sm:$0xff] }
  0x84   : > { %2040 = vmatprep.subr.bf16.mxu1 %v2039_v6  ;;  %v812_v6 = vld [vmem:[#allocation5 + $0x428] sm:$0xff]  ;;  %v2065_v33 = vpack.c.bf16 %v826_v22, %v819_v21  ;;  %v2071_v46 = vpack.c.bf16 %v855_v34, %v848_v30  ;;  %v545_v58 = vld [vmem:[#allocation2 + $0x320] sm:$0xff]  ;;  %v559_v14 = vld [vmem:[#allocation2 + $0x390] sm:$0xff] }
  0x85   : > { %v561_v19 = vld [vmem:[#allocation2 + $0x3a0] sm:$0xff]  ;;  %v563_v21 = vld [vmem:[#allocation2 + $0x3b0] sm:$0xff] }
  0x86   : > { %1958 = vmatpush1.bf16.msra.mxu0 %v1957_v51  ;;  %v526_v51 = vld [vmem:[#allocation2 + $0x288] sm:$0xff]  ;;  %v520_v22 = vld [vmem:[%s2635_s11] sm:$0xfc] }
  0x87   : > { %1960 = vmatprep.subr.bf16.mxu0 %v1959_v52  ;;  %2042 = vmatpush1.bf16.msra.mxu1 %v2041_v16  ;;  %v2053_v52 = vpack.c.bf16 %v784_v44, %v777_v43  ;;  %v1983_v62 = vpack.c.bf16 %v528_v53, %v526_v51  ;;  %v573_v16 = vrot.slane %v521_v1, 2  ;;  %v542_v43 = vld [vmem:[#allocation2 + $0x308] sm:$0xff]  ;;  %v541_v51 = vld [vmem:[#allocation2 + $0x300] sm:$0xff]  ;;  %v551_v1 = vld [vmem:[#allocation2 + $0x350] sm:$0xff] }
  0x88   : > { %2044 = vmatprep.subr.bf16.mxu1 %v2043_v18  ;;  %v2061_v18 = vpack.c.bf16 %v812_v6, %v805_v5  ;;  %v1999_v50 = vpack.c.bf16 %v544_v45, %v542_v43  ;;  %v727_v34 = vld [vmem:[#allocation5 + $0x180] sm:$0xff]  ;;  %v762_v43 = vld [vmem:[#allocation5 + $0x298] sm:$0xff]  ;;  %v769_v45 = vld [vmem:[#allocation5 + $0x2d0] sm:$0xff] }
  0x89   : > { %v575_v32 = vsel %vm569_vm2, %v573_v16, %v574_v17  ;;  %v564_v16 = vld [vmem:[#allocation2 + $0x3b8] sm:$0xff] }
  0x8a   : > { %1962 = vmatpush1.bf16.msra.mxu0 %v1961_v63  ;;  %v530_v63 = vld [vmem:[#allocation2 + $0x2a8] sm:$0xff] }
  0x8b   : > { %1964 = vmatprep.subr.bf16.mxu0 %v1963_v0  ;;  %2046 = vmatpush1.bf16.msra.mxu1 %v2045_v28  ;;  %v532_v0 = vld [vmem:[#allocation2 + $0x2b8] sm:$0xff]  ;;  %v533_v28 = vld [vmem:[#allocation2 + $0x2c0] sm:$0xff] }
  0x8c   : > { %2048 = vmatprep.subr.bf16.mxu1 %v2047_v31  ;;  %v538_v31 = vld [vmem:[#allocation2 + $0x2e8] sm:$0xff]  ;;  %v1993_v39 = vpack.c.bf16 %v535_v29, %v533_v28 }
  0x8d   : > { %v692_v28 = vld [vmem:[#allocation5 + $0x68] sm:$0xff] }
  0x8e   : > { %1966 = vmatpush1.bf16.msra.mxu0 %v1965_v11  ;;  %v529_v11 = vld [vmem:[#allocation2 + $0x2a0] sm:$0xff] }
  0x8f   : > { %1968 = vmatprep.subr.bf16.mxu0 %v1967_v12  ;;  %2050 = vmatpush1.bf16.msra.mxu1 %v2049_v40  ;;  %v1987_v12 = vpack.c.bf16 %v532_v0, %v530_v63  ;;  %v1989_v25 = vpack.c.bf16 %v531_v13, %v529_v11  ;;  %v1995_v40 = vpack.c.bf16 %v540_v35, %v538_v31  ;;  %v549_v0 = vld [vmem:[#allocation2 + $0x340] sm:$0xff]  ;;  %v706_v35 = vld [vmem:[#allocation5 + $0xd8] sm:$0xff] }
  0x90   : > { %2052 = vmatprep.subr.bf16.mxu1 %v2051_v42  ;;  %v539_v42 = vld [vmem:[#allocation2 + $0x2f0] sm:$0xff]  ;;  %v2007_v63 = vpack.c.bf16 %v552_v61, %v550_v60  ;;  %v2009_v5 = vpack.c.bf16 %v551_v1, %v549_v0  ;;  %v2013_v11 = vpack.c.bf16 %v555_v8, %v553_v7  ;;  %v557_v13 = vld [vmem:[#allocation2 + $0x380] sm:$0xff]  ;;  %v846_v61 = vld [vmem:[#allocation5 + $0x538] sm:$0xff] }
  0x91   : > { %v1997_v49 = vpack.c.bf16 %v539_v42, %v537_v41  ;;  %v748_v41 = vld [vmem:[#allocation5 + $0x228] sm:$0xff]  ;;  %v755_v42 = vld [vmem:[#allocation5 + $0x260] sm:$0xff] }
  0x92   : > { %1970 = vmatpush1.bf16.msra.mxu0 %v1969_v23  ;;  %v834_v23 = vld [vmem:[#allocation5 + $0x4d8] sm:$0xff]  ;;  %v839_v60 = vld [vmem:[#allocation5 + $0x500] sm:$0xff]  ;;  %v860_v0 = vld [vmem:[#allocation5 + $0x5a8] sm:$0xff] }
  0x93   : > { %1972 = vmatprep.subr.bf16.mxu0 %v1971_v24  ;;  %2054 = vmatpush1.bf16.msra.mxu1 %v2053_v52  ;;  %v841_v24 = vld [vmem:[#allocation5 + $0x510] sm:$0xff]  ;;  %v868_v7 = vld [vmem:[#allocation5 + $0x5e8] sm:$0xff] }
  0x94   : > { %2056 = vmatprep.subr.bf16.mxu1 %v2055_v54  ;;  %v2067_v36 = vpack.c.bf16 %v841_v24, %v834_v23  ;;  %v543_v52 = vld [vmem:[#allocation2 + $0x310] sm:$0xff]  ;;  %v546_v54 = vld [vmem:[#allocation2 + $0x328] sm:$0xff]  ;;  %v2021_v24 = vpack.c.bf16 %v563_v21, %v561_v19  ;;  %v663_v19 = vld [vmem:[%s2973_s2] sm:$0x3] }
  0x95   : > { %v2001_v56 = vpack.c.bf16 %v543_v52, %v541_v51  ;;  %v2003_v57 = vpack.c.bf16 %v548_v55, %v546_v54  ;;  %v522_v23 = vld [vmem:[%s2635_s11 + $0x10] sm:$0xff]  ;;  %v804_v52 = vld [vmem:[#allocation5 + $0x3e8] sm:$0xff]  ;;  %v811_v54 = vld [vmem:[#allocation5 + $0x420] sm:$0xff] }
  0x96   : > { %1974 = vmatpush1.bf16.msra.mxu0 %v1973_v37  ;;  %v833_v37 = vld [vmem:[#allocation5 + $0x4d0] sm:$0xff]  ;;  %v818_v55 = vld [vmem:[#allocation5 + $0x458] sm:$0xff] }
  0x97   : > { %1976 = vmatprep.subr.bf16.mxu0 %v1975_v38  ;;  %2058 = vmatpush1.bf16.msra.mxu1 %v2057_v2  ;;  %v840_v38 = vld [vmem:[#allocation5 + $0x508] sm:$0xff]  ;;  %v797_v51 = vld [vmem:[#allocation5 + $0x3b0] sm:$0xff] }
  0x98   : > { %2060 = vmatprep.subr.bf16.mxu1 %v2059_v4  ;;  %v2069_v44 = vpack.c.bf16 %v840_v38, %v833_v37  ;;  %v554_v2 = vld [vmem:[#allocation2 + $0x368] sm:$0xff]  ;;  %v556_v4 = vld [vmem:[#allocation2 + $0x378] sm:$0xff]  ;;  %v713_v37 = vld [vmem:[#allocation5 + $0x110] sm:$0xff] }
  0x99   : > { %v2011_v6 = vpack.c.bf16 %v556_v4, %v554_v2  ;;  %v720_v38 = vld [vmem:[#allocation5 + $0x148] sm:$0xff]  ;;  %v862_v2 = vld [vmem:[#allocation5 + $0x5b8] sm:$0xff]  ;;  %v869_v4 = vld [vmem:[#allocation5 + $0x5f0] sm:$0xff] }
  0x9a   : > { %1978 = vmatpush1.bf16.msra.mxu0 %v1977_v47  ;;  %v847_v47 = vld [vmem:[#allocation5 + $0x540] sm:$0xff]  ;;  %v2198_v30 = vpack.c.bf16 %v720_v38, %v713_v37  ;;  %v702_v37 = vld [vmem:[#allocation5 + $0xb8] sm:$0xff] }
  0x9b   : > { %1980 = vmatprep.subr.bf16.mxu0 %v1979_v48  ;;  %2062 = vmatpush1.bf16.msra.mxu1 %v2061_v18  ;;  %v854_v48 = vld [vmem:[#allocation5 + $0x578] sm:$0xff]  ;;  %v2017_v18 = vpack.c.bf16 %v559_v14, %v557_v13  ;;  %v689_v13 = vld [vmem:[#allocation5 + $0x50] sm:$0xff] }
  0x9c   : > { %2064 = vmatprep.subr.bf16.mxu1 %v2063_v20  ;;  %v2073_v53 = vpack.c.bf16 %v854_v48, %v847_v47  ;;  %v783_v48 = vld [vmem:[#allocation5 + $0x340] sm:$0xff] }
  0x9e   : > { %1982 = vmatpush1.bf16.msra.mxu0 %v1981_v59  ;;  %v547_v59 = vld [vmem:[#allocation2 + $0x330] sm:$0xff] }
  0x9f   : > { %1984 = vmatprep.subr.bf16.mxu0 %v1983_v62  ;;  %2066 = vmatpush1.bf16.msra.mxu1 %v2065_v33  ;;  %v2005_v62 = vpack.c.bf16 %v547_v59, %v545_v58  ;;  %v699_v33 = vld [vmem:[#allocation5 + $0xa0] sm:$0xff]  ;;  %v832_v58 = vld [vmem:[#allocation5 + $0x4c8] sm:$0xff] }
  0xa0   : > { %2068 = vmatprep.subr.bf16.mxu1 %v2067_v36  ;;  %v2195_v36 = vpack.c.bf16 %v706_v35, %v699_v33 }
  0xa1   : > { %508 = vmatmul.mubr.f32.vlgmr.msra.gmra.mrb[0].mxu0 %v253_v9  ;;  %v558_v9 = vld [vmem:[#allocation2 + $0x388] sm:$0xff] }
  0xa2   : > { %1986 = vmatpush1.bf16.msra.mxu0 %v1985_v10  ;;  %1819 = vmatprep.mubr.msk.f32.mxu0 %vm355_vm1, %v256_v15  ;;  %v560_v10 = vld [vmem:[#allocation2 + $0x398] sm:$0xff]  ;;  %v562_v15 = vld [vmem:[#allocation2 + $0x3a8] sm:$0xff] }
  0xa3   : > { %1988 = vmatprep.subr.bf16.mxu0 %v1987_v12  ;;  %2070 = vmatpush1.bf16.msra.mxu1 %v2069_v44  ;;  %v2015_v12 = vpack.c.bf16 %v560_v10, %v558_v9  ;;  %v2019_v20 = vpack.c.bf16 %v564_v16, %v562_v15  ;;  %v2207_v44 = vpack.c.bf16 %v762_v43, %v755_v42  ;;  %v867_v9 = vld [vmem:[#allocation5 + $0x5e0] sm:$0xff]  ;;  %v874_v10 = vld [vmem:[#allocation5 + $0x618] sm:$0xff]  ;;  %v665_v15 = vlaneseq  ;;  %v709_v42 = vld [vmem:[#allocation5 + $0xf0] sm:$0xff] }
  0xa4   : > { %2072 = vmatprep.subr.bf16.mxu1 %v2071_v46  ;;  %v776_v46 = vld [vmem:[#allocation5 + $0x308] sm:$0xff] }
  0xa5   : > { %514 = vmatmul.mubr.f32.gmra.mrb[2].mxu0 %v255_v26  ;;  %v571_v26 = vrot.slane %v522_v23, 2  ;;  %v2210_v47 = vpack.c.bf16 %v776_v46, %v769_v45  ;;  %v666_v16 = vshrl.u32 %v665_v15, 7  ;;  %v681_v23 = vld [vmem:[#allocation5 + $0x10] sm:$0xff]  ;;  %v716_v43 = vld [vmem:[#allocation5 + $0x128] sm:$0xff]  ;;  %v731_v45 = vld [vmem:[#allocation5 + $0x1a0] sm:$0xff] }
  0xa6   : > { %1990 = vmatpush1.bf16.msra.mxu0 %v1989_v25  ;;  %1820 = vmatprep.mubr.msk.f32.mxu0 %vm355_vm1, %v575_v32  ;;  %v570_v25 = vrot.slane %v520_v22, 2  ;;  %v2471_v32 = vmov 0.0|0.0   ;;  %v2089_v46 = vpack.c.bf16 %v716_v43, %v709_v42  ;;  %v793_v15 = vld [vmem:[#allocation5 + $0x390] sm:$0xff] }
  0xa7   : > { %1992 = vmatprep.subr.bf16.mxu0 %v1991_v27  ;;  %2074 = vmatpush1.bf16.msra.mxu1 %v2073_v53  ;;  %v685_v27 = vld [vmem:[#allocation5 + $0x30] sm:$0xff]  ;;  %v2216_v53 = vpack.c.bf16 %v804_v52, %v797_v51 }
  0xa8   : > { %v572_v29 = vsel %vm569_vm2, %v570_v25, %v571_v26  ;;  %v2192_v31 = vpack.c.bf16 %v692_v28, %v685_v27  ;;  %v703_v27 = vld [vmem:[#allocation5 + $0xc0] sm:$0xff]  ;;  %v745_v51 = vld [vmem:[#allocation5 + $0x210] sm:$0xff] }
  0xa9   : > { %v849_v43 = vld [vmem:[#allocation5 + $0x550] sm:$0xff] }
  0xaa   : > { %1994 = vmatpush1.bf16.msra.mxu0 %v1993_v39  ;;  %v734_v39 = vld [vmem:[#allocation5 + $0x1b8] sm:$0xff] }
  0xab   : > { %1996 = vmatprep.subr.bf16.mxu0 %v1995_v40  ;;  %v2201_v40 = vpack.c.bf16 %v734_v39, %v727_v34  ;;  %v717_v34 = vld [vmem:[#allocation5 + $0x130] sm:$0xff] }
  0xae   : > { %1998 = vmatpush1.bf16.msra.mxu0 %v1997_v49  ;;  %v790_v49 = vld [vmem:[#allocation5 + $0x378] sm:$0xff] }
  0xaf   : > { %2000 = vmatprep.subr.bf16.mxu0 %v1999_v50  ;;  %v2213_v50 = vpack.c.bf16 %v790_v49, %v783_v48  ;;  %v723_v48 = vld [vmem:[#allocation5 + $0x160] sm:$0xff]  ;;  %v730_v49 = vld [vmem:[#allocation5 + $0x198] sm:$0xff] }
  0xb0   : > { %v2093_v52 = vpack.c.bf16 %v730_v49, %v723_v48  ;;  %v863_v49 = vld [vmem:[#allocation5 + $0x5c0] sm:$0xff] }
  0xb2   : > { %2002 = vmatpush1.bf16.msra.mxu0 %v2001_v56  ;;  %v2219_v56 = vpack.c.bf16 %v818_v55, %v811_v54  ;;  %v737_v54 = vld [vmem:[#allocation5 + $0x1d0] sm:$0xff]  ;;  %v744_v55 = vld [vmem:[#allocation5 + $0x208] sm:$0xff] }
  0xb3   : > { %2004 = vmatprep.subr.bf16.mxu0 %v2003_v57  ;;  %v825_v57 = vld [vmem:[#allocation5 + $0x490] sm:$0xff] }
  0xb4   : > { %v2222_v59 = vpack.c.bf16 %v832_v58, %v825_v57  ;;  %v759_v57 = vld [vmem:[#allocation5 + $0x280] sm:$0xff]  ;;  %v2097_v58 = vpack.c.bf16 %v744_v55, %v737_v54 }
  0xb5   : > { %v683_v55 = vld [vmem:[#allocation5 + $0x20] sm:$0xff] }
  0xb6   : > { %2006 = vmatpush1.bf16.msra.mxu0 %v2005_v62  ;;  %v2225_v62 = vpack.c.bf16 %v846_v61, %v839_v60  ;;  %v751_v60 = vld [vmem:[#allocation5 + $0x240] sm:$0xff]  ;;  %v758_v61 = vld [vmem:[#allocation5 + $0x278] sm:$0xff] }
  0xb7   : > { %2008 = vmatprep.subr.bf16.mxu0 %v2007_v63  ;;  %v853_v63 = vld [vmem:[#allocation5 + $0x570] sm:$0xff] }
  0xb8   : > { %v2228_v1 = vpack.c.bf16 %v860_v0, %v853_v63  ;;  %v773_v63 = vld [vmem:[#allocation5 + $0x2f0] sm:$0xff]  ;;  %v2101_v0 = vpack.c.bf16 %v758_v61, %v751_v60 }
  0xb9   : > { %v697_v61 = vld [vmem:[#allocation5 + $0x90] sm:$0xff] }
  0xba   : > { %2010 = vmatpush1.bf16.msra.mxu0 %v2009_v5  ;;  %v2075_v5 = vpack.c.bf16 %v869_v4, %v862_v2  ;;  %v765_v2 = vld [vmem:[#allocation5 + $0x2b0] sm:$0xff]  ;;  %v772_v4 = vld [vmem:[#allocation5 + $0x2e8] sm:$0xff] }
  0xbb   : > { %2012 = vmatprep.subr.bf16.mxu0 %v2011_v6  ;;  %v861_v6 = vld [vmem:[#allocation5 + $0x5b0] sm:$0xff] }
  0xbc   : > { %v2077_v8 = vpack.c.bf16 %v868_v7, %v861_v6  ;;  %2076 = vmatprep.subr.bf16.mxu1 %v2075_v5  ;;  %v780_v5 = vld [vmem:[#allocation5 + $0x328] sm:$0xff]  ;;  %v787_v6 = vld [vmem:[#allocation5 + $0x360] sm:$0xff]  ;;  %v2105_v7 = vpack.c.bf16 %v772_v4, %v765_v2 }
  0xbd   : > { %v711_v4 = vld [vmem:[#allocation5 + $0x100] sm:$0xff] }
  0xbe   : > { %2014 = vmatpush1.bf16.msra.mxu0 %v2013_v11  ;;  %v2231_v11 = vpack.c.bf16 %v874_v10, %v867_v9  ;;  %2078 = vmatpush1.bf16.msra.mxu1 %v2077_v8  ;;  %v2107_v8 = vpack.c.bf16 %v787_v6, %v780_v5  ;;  %v779_v9 = vld [vmem:[#allocation5 + $0x320] sm:$0xff]  ;;  %v786_v10 = vld [vmem:[#allocation5 + $0x358] sm:$0xff] }
  0xbf   : > { %2016 = vmatprep.subr.bf16.mxu0 %v2015_v12  ;;  %v682_v12 = vld [vmem:[#allocation5 + $0x18] sm:$0xff] }
  0xc0   : > { %v2079_v14 = vpack.c.bf16 %v689_v13, %v682_v12  ;;  %v801_v12 = vld [vmem:[#allocation5 + $0x3d0] sm:$0xff]  ;;  %v2109_v13 = vpack.c.bf16 %v786_v10, %v779_v9  ;;  %v718_v5 = vld [vmem:[#allocation5 + $0x138] sm:$0xff] }
  0xc1   : > { %v726_v6 = vld [vmem:[#allocation5 + $0x178] sm:$0xff]  ;;  %v725_v10 = vld [vmem:[#allocation5 + $0x170] sm:$0xff] }
  0xc2   : > { %2018 = vmatpush1.bf16.msra.mxu0 %v2017_v18  ;;  %2080 = vmatprep.subr.bf16.mxu1 %v2079_v14  ;;  %v671_v18 = vsub.s32 1, %v666_v16 }
  0xc3   : > { %2020 = vmatprep.subr.bf16.mxu0 %v2019_v20  ;;  %v667_v20 = vsub.s32 0, %v666_v16  ;;  %v800_v16 = vld [vmem:[#allocation5 + $0x3c8] sm:$0xff] }
  0xc4   : > { %v672_v21 = vrot.slane %v663_v19, %v671_v18  ;;  %v808_v18 = vld [vmem:[#allocation5 + $0x408] sm:$0xff] }
  0xc5   : > { %v668_v22 = vrot.slane %v663_v19, %v667_v20  ;;  %v815_v19 = vld [vmem:[#allocation5 + $0x440] sm:$0xff]  ;;  %v2113_v20 = vpack.c.bf16 %v800_v16, %v793_v15 }
  0xc6   : > { %2022 = vmatpush1.bf16.msra.mxu0 %v2021_v24  ;;  %v688_v24 = vld [vmem:[#allocation5 + $0x48] sm:$0xff]  ;;  %v739_v16 = vld [vmem:[#allocation5 + $0x1e0] sm:$0xff] }
  0xc7   : > { %2191 = vmatprep.subr.bf16.mxu0 %v2471_v32 }
  0xc9   : > { %647 = vmatmul.mubr.f32.vlgmr.msra.gmra.mrb[0].mxu0 %v572_v29 }
  0xca   : > { %1821 = vmatprep.mubr.msk.f32.mxu0 %vm355_vm1, %v574_v17  ;;  %2193 = vmatpush1.bf16.msra.mxu0 %v2192_v31  ;;  %v2204_v17 = vpack.c.bf16 %v748_v41, %v741_v3  ;;  %v2081_v31 = vpack.c.bf16 %v688_v24, %v681_v23  ;;  %v814_v23 = vld [vmem:[#allocation5 + $0x438] sm:$0xff] }
  0xcb   : > { %2194 = vmatprep.subr.bf16.mxu0 %v2471_v32  ;;  %v822_v24 = vld [vmem:[#allocation5 + $0x478] sm:$0xff] }
  0xcd   : > { %653 = vmatmul.mubr.f32.gmra.mrb[2].mxu0 %v571_v26  ;;  %v696_v26 = vld [vmem:[#allocation5 + $0x88] sm:$0xff] }
  0xce   : > { %2196 = vmatpush1.bf16.msra.mxu0 %v2195_v36  ;;  %v2083_v35 = vpack.c.bf16 %v703_v27, %v696_v26  ;;  %v695_v36 = vld [vmem:[#allocation5 + $0x80] sm:$0xff] }
  0xcf   : > { %2197 = vmatprep.subr.bf16.mxu0 %v2471_v32  ;;  %v2085_v3 = vpack.c.bf16 %v702_v37, %v695_v36  ;;  %v843_v36 = vld [vmem:[#allocation5 + $0x520] sm:$0xff] }
  0xd2   : > { %2199 = vmatpush1.bf16.msra.mxu0 %v2198_v30  ;;  %v710_v30 = vld [vmem:[#allocation5 + $0xf8] sm:$0xff] }
  0xd3   : > { %2200 = vmatprep.subr.bf16.mxu0 %v2471_v32 }
  0xd6   : > { %2202 = vmatpush1.bf16.msra.mxu0 %v2201_v40 }
  0xd7   : > { %2203 = vmatprep.subr.bf16.mxu0 %v2471_v32 }
  0xda   : > { %2205 = vmatpush1.bf16.msra.mxu0 %v2204_v17  ;;  %v2087_v17 = vpack.c.bf16 %v717_v34, %v710_v30  ;;  %v835_v30 = vld [vmem:[#allocation5 + $0x4e0] sm:$0xff]  ;;  %v842_v34 = vld [vmem:[#allocation5 + $0x518] sm:$0xff] }
  0xdb   : > { %2206 = vmatprep.subr.bf16.mxu0 %v2471_v32 }
  0xde   : > { %2208 = vmatpush1.bf16.msra.mxu0 %v2207_v44  ;;  %v724_v44 = vld [vmem:[#allocation5 + $0x168] sm:$0xff] }
  0xdf   : > { %2209 = vmatprep.subr.bf16.mxu0 %v2471_v32 }
  0xe2   : > { %2211 = vmatpush1.bf16.msra.mxu0 %v2210_v47  ;;  %v2091_v47 = vpack.c.bf16 %v731_v45, %v724_v44  ;;  %v856_v44 = vld [vmem:[#allocation5 + $0x588] sm:$0xff] }
  0xe3   : > { %2212 = vmatprep.subr.bf16.mxu0 %v2471_v32  ;;  %v864_v45 = vld [vmem:[#allocation5 + $0x5c8] sm:$0xff] }
  0xe6   : > { %2214 = vmatpush1.bf16.msra.mxu0 %v2213_v50  ;;  %v738_v50 = vld [vmem:[#allocation5 + $0x1d8] sm:$0xff] }
  0xe7   : > { %2215 = vmatprep.subr.bf16.mxu0 %v2471_v32 }
  0xea   : > { %2217 = vmatpush1.bf16.msra.mxu0 %v2216_v53  ;;  %v2095_v53 = vpack.c.bf16 %v745_v51, %v738_v50  ;;  %v870_v50 = vld [vmem:[#allocation5 + $0x5f8] sm:$0xff]  ;;  %v684_v51 = vld [vmem:[#allocation5 + $0x28] sm:$0xff] }
  0xeb   : > { %2218 = vmatprep.subr.bf16.mxu0 %v2471_v32 }
  0xee   : > { %2220 = vmatpush1.bf16.msra.mxu0 %v2219_v56  ;;  %v752_v56 = vld [vmem:[#allocation5 + $0x248] sm:$0xff] }
  0xef   : > { %2221 = vmatprep.subr.bf16.mxu0 %v2471_v32 }
  0xf2   : > { %2223 = vmatpush1.bf16.msra.mxu0 %v2222_v59  ;;  %v2099_v59 = vpack.c.bf16 %v759_v57, %v752_v56  ;;  %v690_v56 = vld [vmem:[#allocation5 + $0x58] sm:$0xff] }
  0xf3   : > { %2224 = vmatprep.subr.bf16.mxu0 %v2471_v32  ;;  %v698_v57 = vld [vmem:[#allocation5 + $0x98] sm:$0xff] }
  0xf6   : > { %2226 = vmatpush1.bf16.msra.mxu0 %v2225_v62  ;;  %v766_v62 = vld [vmem:[#allocation5 + $0x2b8] sm:$0xff] }
  0xf7   : > { %2227 = vmatprep.subr.bf16.mxu0 %v2471_v32 }
  0xfa   : > { %2229 = vmatpush1.bf16.msra.mxu0 %v2228_v1  ;;  %v2103_v1 = vpack.c.bf16 %v773_v63, %v766_v62  ;;  %v704_v62 = vld [vmem:[#allocation5 + $0xc8] sm:$0xff] }
  0xfb   : > { %2230 = vmatprep.subr.bf16.mxu0 %v2471_v32  ;;  %v712_v63 = vld [vmem:[#allocation5 + $0x108] sm:$0xff] }
  0xfe   : > { %2232 = vmatpush1.bf16.msra.mxu0 %v2231_v11  ;;  %v794_v11 = vld [vmem:[#allocation5 + $0x398] sm:$0xff] }
  0xff   : > { %v2111_v14 = vpack.c.bf16 %v801_v12, %v794_v11  ;;  %v732_v11 = vld [vmem:[#allocation5 + $0x1a8] sm:$0xff] }
 0x100   : > { %v740_v12 = vld [vmem:[#allocation5 + $0x1e8] sm:$0xff] }
 0x19c   : > { %v648_v25 = vpop.f32.mrb[0].mxu0 }
 0x19d   : > { %v650_v28 = vpop.f32.mrb[1].mxu0  ;;  %v2692_v33 = vadd.f32 %v668_v22, %v648_v25  ;;  %v829_v25 = vld [vmem:[#allocation5 + $0x4b0] sm:$0xff] }
 0x19e   : > { %v2690_v29 = vadd.f32 %v672_v21, %v650_v28  ;;  %v2119_v27 = vpack.c.bf16 %v829_v25, %v822_v24  ;;  %v821_v28 = vld [vmem:[#allocation5 + $0x470] sm:$0xff]  ;;  %v768_v24 = vld [vmem:[#allocation5 + $0x2c8] sm:$0xff]  ;;  %v775_v25 = vld [vmem:[#allocation5 + $0x300] sm:$0xff] }
 0x1a0   : > { %v654_v38 = vpop.f32.mrb[2].mxu0  ;;  %1822 = vmatprep.mubr.msk.f32.mxu1 %vm875_vm3, %v2690_v29  ;;  %1828 = vmatprep.mubr.msk.f32.mxu0 %vm875_vm3, %v2690_v29 }
 0x1a1   : > { %v656_v39 = vpop.f32.mrb[3].mxu0  ;;  %947 = vmatmul.mubr.f32.vlgmr.msra.gmra.mrb[0].mxu1 %v2692_v33  ;;  %1178 = vmatmul.mubr.f32.vlgmr.msra.gmra.mrb[4].mxu0 %v2692_v33  ;;  %v2702_v41 = vadd.f32 %v668_v22, %v654_v38  ;;  %v807_v22 = vld [vmem:[#allocation5 + $0x400] sm:$0xff] }
 0x1a2   : > { %v2700_v40 = vadd.f32 %v672_v21, %v656_v39  ;;  %2082 = vmatpush1.bf16.msra.mxu1 %v2081_v31  ;;  %v2115_v21 = vpack.c.bf16 %v815_v19, %v808_v18  ;;  %v2117_v26 = vpack.c.bf16 %v814_v23, %v807_v22  ;;  %v828_v31 = vld [vmem:[#allocation5 + $0x4a8] sm:$0xff]  ;;  %v850_v39 = vld [vmem:[#allocation5 + $0x558] sm:$0xff] }
 0x1a3   : > { %2084 = vmatprep.subr.bf16.mxu1 %v2083_v35  ;;  %v836_v35 = vld [vmem:[#allocation5 + $0x4e8] sm:$0xff]  ;;  %v2121_v37 = vpack.c.bf16 %v828_v31, %v821_v28  ;;  %v746_v18 = vld [vmem:[#allocation5 + $0x218] sm:$0xff]  ;;  %v767_v28 = vld [vmem:[#allocation5 + $0x2c0] sm:$0xff] }
 0x1a4   : > { %1823 = vmatprep.mubr.msk.f32.mxu1 %vm875_vm3, %v2700_v40  ;;  %1829 = vmatprep.mubr.msk.f32.mxu0 %vm875_vm3, %v2700_v40  ;;  %v2123_v38 = vpack.c.bf16 %v843_v36, %v836_v35  ;;  %v754_v19 = vld [vmem:[#allocation5 + $0x258] sm:$0xff]  ;;  %v760_v23 = vld [vmem:[#allocation5 + $0x288] sm:$0xff]  ;;  %v789_v36 = vld [vmem:[#allocation5 + $0x370] sm:$0xff] }
 0x1a5   : > { %953 = vmatmul.mubr.f32.gmra.mrb[2].mxu1 %v2702_v41  ;;  %1183 = vmatmul.mubr.f32.gmra.mrb[6].mxu0 %v2702_v41  ;;  %v774_v31 = vld [vmem:[#allocation5 + $0x2f8] sm:$0xff] }
 0x1a6   : > { %2086 = vmatpush1.bf16.msra.mxu1 %v2085_v3  ;;  %1824 = vmatprep.mubr.msk.f32.mxu1 %vm875_vm3, %v2690_v29  ;;  %v857_v3 = vld [vmem:[#allocation5 + $0x590] sm:$0xff]  ;;  %v782_v35 = vld [vmem:[#allocation5 + $0x338] sm:$0xff] }
 0x1a7   : > { %2088 = vmatprep.subr.bf16.mxu1 %v2087_v17  ;;  %v2125_v17 = vpack.c.bf16 %v842_v34, %v835_v30  ;;  %v2127_v42 = vpack.c.bf16 %v857_v3, %v850_v39  ;;  %v781_v30 = vld [vmem:[#allocation5 + $0x330] sm:$0xff]  ;;  %v788_v34 = vld [vmem:[#allocation5 + $0x368] sm:$0xff]  ;;  %v803_v3 = vld [vmem:[#allocation5 + $0x3e0] sm:$0xff] }
 0x1a8   : > { %v796_v39 = vld [vmem:[#allocation5 + $0x3a8] sm:$0xff] }
 0x1aa   : > { %2090 = vmatpush1.bf16.msra.mxu1 %v2089_v46  ;;  %v871_v46 = vld [vmem:[#allocation5 + $0x600] sm:$0xff] }
 0x1ab   : > { %2092 = vmatprep.subr.bf16.mxu1 %v2091_v47  ;;  %v2129_v47 = vpack.c.bf16 %v856_v44, %v849_v43  ;;  %v2131_v48 = vpack.c.bf16 %v871_v46, %v864_v45  ;;  %v795_v43 = vld [vmem:[#allocation5 + $0x3a0] sm:$0xff]  ;;  %v802_v44 = vld [vmem:[#allocation5 + $0x3d8] sm:$0xff]  ;;  %v817_v46 = vld [vmem:[#allocation5 + $0x450] sm:$0xff] }
 0x1ac   : > { %v810_v45 = vld [vmem:[#allocation5 + $0x418] sm:$0xff] }
 0x1ae   : > { %2094 = vmatpush1.bf16.msra.mxu1 %v2093_v52  ;;  %v691_v52 = vld [vmem:[#allocation5 + $0x60] sm:$0xff] }
 0x1af   : > { %2096 = vmatprep.subr.bf16.mxu1 %v2095_v53  ;;  %v2133_v53 = vpack.c.bf16 %v870_v50, %v863_v49  ;;  %v2135_v54 = vpack.c.bf16 %v691_v52, %v684_v51  ;;  %v809_v49 = vld [vmem:[#allocation5 + $0x410] sm:$0xff]  ;;  %v816_v50 = vld [vmem:[#allocation5 + $0x448] sm:$0xff]  ;;  %v831_v52 = vld [vmem:[#allocation5 + $0x4c0] sm:$0xff] }
 0x1b0   : > { %v824_v51 = vld [vmem:[#allocation5 + $0x488] sm:$0xff] }
 0x1b2   : > { %2098 = vmatpush1.bf16.msra.mxu1 %v2097_v58  ;;  %v705_v58 = vld [vmem:[#allocation5 + $0xd0] sm:$0xff] }
 0x1b3   : > { %2100 = vmatprep.subr.bf16.mxu1 %v2099_v59  ;;  %v2137_v59 = vpack.c.bf16 %v690_v56, %v683_v55  ;;  %v2139_v60 = vpack.c.bf16 %v705_v58, %v698_v57  ;;  %v823_v55 = vld [vmem:[#allocation5 + $0x480] sm:$0xff]  ;;  %v830_v56 = vld [vmem:[#allocation5 + $0x4b8] sm:$0xff]  ;;  %v845_v58 = vld [vmem:[#allocation5 + $0x530] sm:$0xff] }
 0x1b4   : > { %v838_v57 = vld [vmem:[#allocation5 + $0x4f8] sm:$0xff] }
 0x1b6   : > { %2102 = vmatpush1.bf16.msra.mxu1 %v2101_v0  ;;  %v719_v0 = vld [vmem:[#allocation5 + $0x140] sm:$0xff] }
 0x1b7   : > { %2104 = vmatprep.subr.bf16.mxu1 %v2103_v1  ;;  %v2141_v1 = vpack.c.bf16 %v704_v62, %v697_v61  ;;  %v2143_v2 = vpack.c.bf16 %v719_v0, %v712_v63  ;;  %v837_v61 = vld [vmem:[#allocation5 + $0x4f0] sm:$0xff]  ;;  %v844_v62 = vld [vmem:[#allocation5 + $0x528] sm:$0xff]  ;;  %v859_v0 = vld [vmem:[#allocation5 + $0x5a0] sm:$0xff] }
 0x1b8   : > { %v852_v63 = vld [vmem:[#allocation5 + $0x568] sm:$0xff] }
 0x1ba   : > { %2106 = vmatpush1.bf16.msra.mxu1 %v2105_v7  ;;  %v733_v7 = vld [vmem:[#allocation5 + $0x1b0] sm:$0xff] }
 0x1bb   : > { %2108 = vmatprep.subr.bf16.mxu1 %v2107_v8  ;;  %v2145_v8 = vpack.c.bf16 %v718_v5, %v711_v4  ;;  %v2147_v9 = vpack.c.bf16 %v733_v7, %v726_v6  ;;  %v851_v4 = vld [vmem:[#allocation5 + $0x560] sm:$0xff]  ;;  %v858_v5 = vld [vmem:[#allocation5 + $0x598] sm:$0xff]  ;;  %v873_v7 = vld [vmem:[#allocation5 + $0x610] sm:$0xff] }
 0x1bc   : > { %v866_v6 = vld [vmem:[#allocation5 + $0x5d8] sm:$0xff] }
 0x1be   : > { %2110 = vmatpush1.bf16.msra.mxu1 %v2109_v13  ;;  %v747_v13 = vld [vmem:[#allocation5 + $0x220] sm:$0xff] }
 0x1bf   : > { %2112 = vmatprep.subr.bf16.mxu1 %v2111_v14  ;;  %v2149_v14 = vpack.c.bf16 %v732_v11, %v725_v10  ;;  %v2151_v15 = vpack.c.bf16 %v747_v13, %v740_v12  ;;  %v865_v10 = vld [vmem:[#allocation5 + $0x5d0] sm:$0xff]  ;;  %v872_v11 = vld [vmem:[#allocation5 + $0x608] sm:$0xff]  ;;  %v2472_v13 = vmov 0.0  }
 0x1c0   : > { %v2189_v12 = vpack.c.bf16 %v872_v11, %v865_v10  ;;  %1409 = vmatprep.mubr.f32.mxu0 %v2472_v13 }
 0x1c2   : > { %2114 = vmatpush1.bf16.msra.mxu1 %v2113_v20  ;;  %v761_v20 = vld [vmem:[#allocation5 + $0x290] sm:$0xff] }
 0x1c3   : > { %2116 = vmatprep.subr.bf16.mxu1 %v2115_v21  ;;  %v2153_v21 = vpack.c.bf16 %v746_v18, %v739_v16  ;;  %v2155_v22 = vpack.c.bf16 %v761_v20, %v754_v19 }
 0x1c6   : > { %2118 = vmatpush1.bf16.msra.mxu1 %v2117_v26 }
 0x1c7   : > { %2120 = vmatprep.subr.bf16.mxu1 %v2119_v27  ;;  %v2159_v27 = vpack.c.bf16 %v775_v25, %v768_v24  ;;  %v2744_v24 = vld [vmem:[%s2975_s4 + $0x8] sm:$0xff]  ;;  %v2752_v25 = vld [vmem:[%s2975_s4 + $0x10] sm:$0xff] }
 0x1ca   : > { %2122 = vmatpush1.bf16.msra.mxu1 %v2121_v37  ;;  %v2161_v37 = vpack.c.bf16 %v774_v31, %v767_v28  ;;  %v2776_v28 = vld [vmem:[%s2975_s4 + $0x28] sm:$0xff]  ;;  %v2784_v31 = vld [vmem:[%s2975_s4 + $0x30] sm:$0xff] }
 0x1cb   : > { %2124 = vmatprep.subr.bf16.mxu1 %v2123_v38  ;;  %v2163_v38 = vpack.c.bf16 %v789_v36, %v782_v35 }
 0x1ce   : > { %2126 = vmatpush1.bf16.msra.mxu1 %v2125_v17  ;;  %v2165_v17 = vpack.c.bf16 %v788_v34, %v781_v30 }
 0x1cf   : > { %2128 = vmatprep.subr.bf16.mxu1 %v2127_v42  ;;  %v2167_v42 = vpack.c.bf16 %v803_v3, %v796_v39 }
 0x1d2   : > { %2130 = vmatpush1.bf16.msra.mxu1 %v2129_v47  ;;  %v2169_v47 = vpack.c.bf16 %v802_v44, %v795_v43 }
 0x1d3   : > { %2132 = vmatprep.subr.bf16.mxu1 %v2131_v48  ;;  %v2171_v48 = vpack.c.bf16 %v817_v46, %v810_v45 }
 0x1d6   : > { %2134 = vmatpush1.bf16.msra.mxu1 %v2133_v53  ;;  %v2173_v53 = vpack.c.bf16 %v816_v50, %v809_v49 }
 0x1d7   : > { %2136 = vmatprep.subr.bf16.mxu1 %v2135_v54  ;;  %v2175_v54 = vpack.c.bf16 %v831_v52, %v824_v51 }
 0x1d9   : > { %1024 = vmatmul.mubr.f32.vlgmr.msra.gmra.mrb[4].mxu1 %v2692_v33 }
 0x1da   : > { %1825 = vmatprep.mubr.msk.f32.mxu1 %vm875_vm3, %v2700_v40  ;;  %2138 = vmatpush1.bf16.msra.mxu1 %v2137_v59  ;;  %v2177_v59 = vpack.c.bf16 %v830_v56, %v823_v55 }
 0x1db   : > { %2140 = vmatprep.subr.bf16.mxu1 %v2139_v60  ;;  %v2179_v60 = vpack.c.bf16 %v845_v58, %v838_v57 }
 0x1dd   : > { %1030 = vmatmul.mubr.f32.gmra.mrb[6].mxu1 %v2702_v41 }
 0x1de   : > { %2142 = vmatpush1.bf16.msra.mxu1 %v2141_v1  ;;  %1826 = vmatprep.mubr.msk.f32.mxu1 %vm875_vm3, %v2690_v29  ;;  %v753_v29 = vld [vmem:[#allocation5 + $0x250] sm:$0xff]  ;;  %v2181_v1 = vpack.c.bf16 %v844_v62, %v837_v61 }
 0x1df   : > { %2144 = vmatprep.subr.bf16.mxu1 %v2143_v2  ;;  %v2157_v26 = vpack.c.bf16 %v760_v23, %v753_v29  ;;  %v2183_v2 = vpack.c.bf16 %v859_v0, %v852_v63  ;;  %v2736_v23 = vld [vmem:[%s2975_s4] sm:$0xff] }
 0x1e2   : > { %2146 = vmatpush1.bf16.msra.mxu1 %v2145_v8  ;;  %v2185_v8 = vpack.c.bf16 %v858_v5, %v851_v4 }
 0x1e3   : > { %2148 = vmatprep.subr.bf16.mxu1 %v2147_v9  ;;  %v2187_v9 = vpack.c.bf16 %v873_v7, %v866_v6 }
 0x1e6   : > { %2150 = vmatpush1.bf16.msra.mxu1 %v2149_v14 }
 0x1e7   : > { %2152 = vmatprep.subr.bf16.mxu1 %v2151_v15 }
 0x1ea   : > { %2154 = vmatpush1.bf16.msra.mxu1 %v2153_v21 }
 0x1eb   : > { %2156 = vmatprep.subr.bf16.mxu1 %v2155_v22 }
 0x1ee   : > { %2158 = vmatpush1.bf16.msra.mxu1 %v2157_v26  ;;  %v2760_v26 = vld [vmem:[%s2975_s4 + $0x18] sm:$0xff] }
 0x1ef   : > { %2160 = vmatprep.subr.bf16.mxu1 %v2159_v27  ;;  %v2768_v27 = vld [vmem:[%s2975_s4 + $0x20] sm:$0xff] }
 0x1f2   : > { %2162 = vmatpush1.bf16.msra.mxu1 %v2161_v37 }
 0x1f3   : > { %2164 = vmatprep.subr.bf16.mxu1 %v2163_v38 }
 0x1f6   : > { %2166 = vmatpush1.bf16.msra.mxu1 %v2165_v17 }
 0x1f7   : > { %2168 = vmatprep.subr.bf16.mxu1 %v2167_v42 }
 0x1fa   : > { %2170 = vmatpush1.bf16.msra.mxu1 %v2169_v47 }
 0x1fb   : > { %2172 = vmatprep.subr.bf16.mxu1 %v2171_v48 }
 0x1fe   : > { %2174 = vmatpush1.bf16.msra.mxu1 %v2173_v53 }
 0x1ff   : > { %2176 = vmatprep.subr.bf16.mxu1 %v2175_v54 }
 0x202   : > { %2178 = vmatpush1.bf16.msra.mxu1 %v2177_v59 }
 0x203   : > { %2180 = vmatprep.subr.bf16.mxu1 %v2179_v60 }
 0x206   : > { %2182 = vmatpush1.bf16.msra.mxu1 %v2181_v1 }
 0x207   : > { %2184 = vmatprep.subr.bf16.mxu1 %v2183_v2 }
 0x20a   : > { %2186 = vmatpush1.bf16.msra.mxu1 %v2185_v8 }
 0x20b   : > { %2188 = vmatprep.subr.bf16.mxu1 %v2187_v9 }
 0x20e   : > { %2190 = vmatpush1.bf16.msra.mxu1 %v2189_v12 }
 0x211   : > { %1101 = vmatmul.mubr.f32.vlgmr.msra.gmra.mrb[8].mxu1 %v2692_v33 }
 0x212   : > { %1827 = vmatprep.mubr.msk.f32.mxu1 %vm875_vm3, %v2700_v40 }
 0x215   : > { %1107 = vmatmul.mubr.f32.gmra.mrb[10].mxu1 %v2702_v41 }
 0x216   : > { %1302 = vmatprep.mubr.f32.mxu1 %v2472_v13 }
 0x274   : > { %v948_v14 = vpop.f32.mrb[0].mxu1  ;;  %v1179_v15 = vpop.f32.mrb[4].mxu0 }
 0x275   : > { %v950_v16 = vpop.f32.mrb[1].mxu1  ;;  %v1181_v18 = vpop.f32.mrb[5].mxu0 }
 0x278   : > { %v954_v19 = vpop.f32.mrb[2].mxu1  ;;  %v1184_v20 = vpop.f32.mrb[6].mxu0 }
 0x279   : > { %v2236_v40 = vpack.c.bf16 %v954_v19, %v948_v14  ;;  %v2252_v21 = vpack.c.bf16 %v1184_v20, %v1179_v15  ;;  %v956_v41 = vpop.f32.mrb[3].mxu1  ;;  %v1186_v22 = vpop.f32.mrb[7].mxu0 }
 0x27a   : > { %v2233_v29 = vpack.c.bf16 %v956_v41, %v950_v16 }
 0x27c   : > { %2235 = vmatprep.subr.msk.bf16.mxu1 %vm2725_vm5, %v2233_v29 }
 0x27d   : > { %2238 = vmatpush1.bf16.msk.msra.mxu1 %vm2725_vm5, %v2236_v40 }
 0x280   : > { %1832 = vmatmul.mubr.msk.f32.vlgmr.msra.gmra.mrb[12].mxu1 %vm1195_vm6, %v2736_v23 }
 0x281   : > { %1308 = vmatprep.mubr.f32.mxu1 %v2472_v13 }
 0x284   : > { %1833 = vmatmul.mubr.msk.f32.gmra.mrb[14].mxu1 %vm1195_vm6, %v2744_v24 }
 0x285   : > { %1314 = vmatprep.mubr.f32.mxu1 %v2472_v13 }
 0x288   : > { %1834 = vmatmul.mubr.msk.f32.gmra.mrb[16].mxu1 %vm1195_vm6, %v2752_v25 }
 0x289   : > { %1320 = vmatprep.mubr.f32.mxu1 %v2472_v13 }
 0x28c   : > { %1835 = vmatmul.mubr.msk.f32.gmra.mrb[18].mxu1 %vm1195_vm6, %v2760_v26 }
 0x28d   : > { %1326 = vmatprep.mubr.f32.mxu1 %v2472_v13 }
 0x290   : > { %1836 = vmatmul.mubr.msk.f32.gmra.mrb[20].mxu1 %vm1195_vm6, %v2768_v27 }
 0x291   : > { %1332 = vmatprep.mubr.f32.mxu1 %v2472_v13 }
 0x294   : > { %1837 = vmatmul.mubr.msk.f32.gmra.mrb[22].mxu1 %vm1195_vm6, %v2776_v28 }
 0x295   : > { %1338 = vmatprep.mubr.f32.mxu1 %v2472_v13 }
 0x298   : > { %1838 = vmatmul.mubr.msk.f32.gmra.mrb[24].mxu1 %vm1195_vm6, %v2784_v31 }
 0x299   : > { %1445 = vmatprep.mubr.f32.mxu1 %v2472_v13 }
 0x2ac   : > { %v1025_v35 = vpop.f32.mrb[4].mxu1 }
 0x2ad   : > { %v1027_v36 = vpop.f32.mrb[5].mxu1 }
 0x2b0   : > { %v1031_v37 = vpop.f32.mrb[6].mxu1 }
 0x2b1   : > { %v2242_v38 = vpack.c.bf16 %v1031_v37, %v1025_v35  ;;  %v1033_v30 = vpop.f32.mrb[7].mxu1 }
 0x2b2   : > { %v2239_v34 = vpack.c.bf16 %v1033_v30, %v1027_v36 }
 0x2b4   : > { %2241 = vmatprep.subr.msk.bf16.mxu0 %vm2725_vm5, %v2239_v34  ;;  %2255 = vmatprep.subr.msk.bf16.mxu1 %vm2725_vm5, %v2239_v34 }
 0x2b5   : > { %2244 = vmatpush1.bf16.msk.msra.mxu0 %vm2725_vm5, %v2242_v38  ;;  %2256 = vmatpush1.bf16.msk.msra.mxu1 %vm2725_vm5, %v2242_v38 }
 0x2b6   : > { %2251 = vmatprep.subr.bf16.mxu0 %v2471_v32 }
 0x2b8   : > { %1841 = vmatmul.mubr.msk.f32.vlgmr.msra.gmra.mrb[8].mxu0 %vm1195_vm6, %v2736_v23  ;;  %1847 = vmatmul.mubr.msk.f32.vlgmr.msra.gmra.mrb[26].mxu1 %vm1195_vm6, %v2784_v31 }
 0x2b9   : > { %2254 = vmatpush3.bf16.msk.msra.mxu0 %vm2725_vm5, %v2252_v21  ;;  %1415 = vmatprep.mubr.f32.mxu0 %v2472_v13 }
 0x2ba   : > { %1516 = vmatprep.mubr.f32.mxu1 %v2472_v13 }
 0x2bc   : > { %1842 = vmatmul.mubr.msk.f32.gmra.mrb[10].mxu0 %vm1195_vm6, %v2744_v24 }
 0x2bd   : > { %1421 = vmatprep.mubr.f32.mxu0 %v2472_v13 }
 0x2c0   : > { %1843 = vmatmul.mubr.msk.f32.gmra.mrb[12].mxu0 %vm1195_vm6, %v2752_v25 }
 0x2c1   : > { %1427 = vmatprep.mubr.f32.mxu0 %v2472_v13 }
 0x2c4   : > { %1844 = vmatmul.mubr.msk.f32.gmra.mrb[14].mxu0 %vm1195_vm6, %v2760_v26 }
 0x2c5   : > { %1433 = vmatprep.mubr.f32.mxu0 %v2472_v13 }
 0x2c8   : > { %1845 = vmatmul.mubr.msk.f32.gmra.mrb[16].mxu0 %vm1195_vm6, %v2768_v27 }
 0x2c9   : > { %1439 = vmatprep.mubr.f32.mxu0 %v2472_v13 }
 0x2cc   : > { %1846 = vmatmul.mubr.msk.f32.gmra.mrb[18].mxu0 %vm1195_vm6, %v2776_v28 }
 0x2cd   : > { %1882 = vmatprep.mubr.msk.f32.mxu0 %vm2474_vm7, %v2472_v13 }
 0x2d0   : > { %1883 = vmatmul.mubr.msk.f32.vlgmr.msra.gmra.mrb[20].mxu0 %vm1195_vm6, %v2736_v23 }
 0x2d1   : > { %1885 = vmatprep.mubr.msk.f32.mxu0 %vm2474_vm7, %v2472_v13 }
 0x2d4   : > { %1886 = vmatmul.mubr.msk.f32.gmra.mrb[22].mxu0 %vm1195_vm6, %v2744_v24 }
 0x2d5   : > { %1888 = vmatprep.mubr.msk.f32.mxu0 %vm2474_vm7, %v2472_v13 }
 0x2d8   : > { %1889 = vmatmul.mubr.msk.f32.gmra.mrb[24].mxu0 %vm1195_vm6, %v2752_v25 }
 0x2d9   : > { %1891 = vmatprep.mubr.msk.f32.mxu0 %vm2474_vm7, %v2472_v13 }
 0x2dc   : > { %1892 = vmatmul.mubr.msk.f32.gmra.mrb[26].mxu0 %vm1195_vm6, %v2760_v26 }
 0x2dd   : > { %1894 = vmatprep.mubr.msk.f32.mxu0 %vm2474_vm7, %v2472_v13 }
 0x2e0   : > { %1895 = vmatmul.mubr.msk.f32.gmra.mrb[28].mxu0 %vm1195_vm6, %v2768_v27 }
 0x2e1   : > { %1897 = vmatprep.mubr.msk.f32.mxu0 %vm2474_vm7, %v2472_v13 }
 0x2e4   : > { %v1102_v32 = vpop.f32.mrb[8].mxu1  ;;  %1898 = vmatmul.mubr.msk.f32.gmra.mrb[30].mxu0 %vm1195_vm6, %v2776_v28 }
 0x2e5   : > { %v1104_v39 = vpop.f32.mrb[9].mxu1  ;;  %1900 = vmatprep.mubr.msk.f32.mxu0 %vm2474_vm7, %v2472_v13 }
 0x2e8   : > { %v1108_v3 = vpop.f32.mrb[10].mxu1  ;;  %1901 = vmatmul.mubr.msk.f32.gmra.mrb[32].mxu0 %vm1195_vm6, %v2784_v31 }
 0x2e9   : > { %v2248_v17 = vpack.c.bf16 %v1108_v3, %v1102_v32  ;;  %v1110_v42 = vpop.f32.mrb[11].mxu1 }
 0x2ea   : > { %v2245_v43 = vpack.c.bf16 %v1110_v42, %v1104_v39 }
 0x2ec   : > { %2247 = vmatprep.subr.msk.bf16.mxu1 %vm2725_vm5, %v2245_v43 }
 0x2ed   : > { %2250 = vmatpush1.bf16.msk.msra.mxu1 %vm2725_vm5, %v2248_v17 }
 0x2f0   : > { %1850 = vmatmul.mubr.msk.f32.vlgmr.msra.gmra.mrb[28].mxu1 %vm1195_vm6, %v2736_v23 }
 0x2f1   : > { %1522 = vmatprep.mubr.f32.mxu1 %v2472_v13 }
 0x2f4   : > { %1851 = vmatmul.mubr.msk.f32.gmra.mrb[30].mxu1 %vm1195_vm6, %v2744_v24 }
 0x2f5   : > { %1528 = vmatprep.mubr.f32.mxu1 %v2472_v13 }
 0x2f8   : > { %1852 = vmatmul.mubr.msk.f32.gmra.mrb[32].mxu1 %vm1195_vm6, %v2752_v25 }
 0x2f9   : > { %1534 = vmatprep.mubr.f32.mxu1 %v2472_v13 }
 0x2fc   : > { %1853 = vmatmul.mubr.msk.f32.gmra.mrb[34].mxu1 %vm1195_vm6, %v2760_v26 }
 0x2fd   : > { %1540 = vmatprep.mubr.f32.mxu1 %v2472_v13 }
 0x300   : > { %1854 = vmatmul.mubr.msk.f32.gmra.mrb[36].mxu1 %vm1195_vm6, %v2768_v27 }
 0x301   : > { %1546 = vmatprep.mubr.f32.mxu1 %v2472_v13 }
 0x304   : > { %1855 = vmatmul.mubr.msk.f32.gmra.mrb[38].mxu1 %vm1195_vm6, %v2776_v28 }
 0x305   : > { %1552 = vmatprep.mubr.f32.mxu1 %v2472_v13 }
 0x308   : > { %1856 = vmatmul.mubr.msk.f32.gmra.mrb[40].mxu1 %vm1195_vm6, %v2784_v31 }
 0x353   : > { %v1304_v44 = vpop.f32.mrb[12].mxu1 }
 0x354   : > { %1659 = vst [vmem:[%s2868_s14] sm:$0xff] %v1304_v44  ;;  %v1306_v45 = vpop.f32.mrb[13].mxu1 }
 0x355   : > { %1660 = vst [vmem:[%s2868_s14 + $0x8] sm:$0xff] %v1306_v45 }
 0x357   : > { %v1310_v46 = vpop.f32.mrb[14].mxu1 }
 0x358   : > { %1666 = vst [vmem:[%s2868_s14 + $0x38] sm:$0xff] %v1310_v46  ;;  %v1312_v47 = vpop.f32.mrb[15].mxu1 }
 0x359   : > { %1667 = vst [vmem:[%s2868_s14 + $0x40] sm:$0xff] %v1312_v47 }
 0x35b   : > { %v1316_v48 = vpop.f32.mrb[16].mxu1 }
 0x35c   : > { %1673 = vst [vmem:[%s2868_s14 + $0x70] sm:$0xff] %v1316_v48  ;;  %v1318_v49 = vpop.f32.mrb[17].mxu1 }
 0x35d   : > { %1674 = vst [vmem:[%s2868_s14 + $0x78] sm:$0xff] %v1318_v49 }
 0x35f   : > { %v1322_v50 = vpop.f32.mrb[18].mxu1 }
 0x360   : > { %1680 = vst [vmem:[%s2868_s14 + $0xa8] sm:$0xff] %v1322_v50  ;;  %v1324_v51 = vpop.f32.mrb[19].mxu1 }
 0x361   : > { %1681 = vst [vmem:[%s2868_s14 + $0xb0] sm:$0xff] %v1324_v51 }
 0x363   : > { %v1328_v52 = vpop.f32.mrb[20].mxu1 }
 0x364   : > { %1687 = vst [vmem:[%s2868_s14 + $0xe0] sm:$0xff] %v1328_v52  ;;  %v1330_v53 = vpop.f32.mrb[21].mxu1 }
 0x365   : > { %1688 = vst [vmem:[%s2868_s14 + $0xe8] sm:$0xff] %v1330_v53 }
 0x367   : > { %v1334_v54 = vpop.f32.mrb[22].mxu1 }
 0x368   : > { %1694 = vst [vmem:[%s2868_s14 + $0x118] sm:$0xff] %v1334_v54  ;;  %v1336_v55 = vpop.f32.mrb[23].mxu1 }
 0x369   : > { %1695 = vst [vmem:[%s2868_s14 + $0x120] sm:$0xff] %v1336_v55 }
 0x36b   : > { %v1340_v56 = vpop.f32.mrb[24].mxu1 }
 0x36c   : > { %1701 = vst [vmem:[%s2868_s14 + $0x150] sm:$0xff] %v1340_v56  ;;  %v1342_v57 = vpop.f32.mrb[25].mxu1 }
 0x36d   : > { %1702 = vst [vmem:[%s2868_s14 + $0x158] sm:$0xff] %v1342_v57 }
 0x38b   : > { %v1411_v58 = vpop.f32.mrb[8].mxu0  ;;  %v1447_v59 = vpop.f32.mrb[26].mxu1 }
 0x38c   : > { %1661 = vst [vmem:[%s2868_s14 + $0x10] sm:$0xff] %v1411_v58  ;;  %v1413_v60 = vpop.f32.mrb[9].mxu0  ;;  %1703 = vst [vmem:[%s2868_s14 + $0x160] sm:$0xff] %v1447_v59  ;;  %v1449_v61 = vpop.f32.mrb[27].mxu1 }
 0x38d   : > { %1662 = vst [vmem:[%s2868_s14 + $0x18] sm:$0xff] %v1413_v60  ;;  %1704 = vst [vmem:[%s2868_s14 + $0x168] sm:$0xff] %v1449_v61 }
 0x38f   : > { %v1417_v62 = vpop.f32.mrb[10].mxu0 }
 0x390   : > { %1668 = vst [vmem:[%s2868_s14 + $0x48] sm:$0xff] %v1417_v62  ;;  %v1419_v63 = vpop.f32.mrb[11].mxu0 }
 0x391   : > { %1669 = vst [vmem:[%s2868_s14 + $0x50] sm:$0xff] %v1419_v63 }
 0x393   : > { %v1423_v0 = vpop.f32.mrb[12].mxu0 }
 0x394   : > { %1675 = vst [vmem:[%s2868_s14 + $0x80] sm:$0xff] %v1423_v0  ;;  %v1425_v1 = vpop.f32.mrb[13].mxu0 }
 0x395   : > { %1676 = vst [vmem:[%s2868_s14 + $0x88] sm:$0xff] %v1425_v1 }
 0x397   : > { %v1429_v2 = vpop.f32.mrb[14].mxu0 }
 0x398   : > { %1682 = vst [vmem:[%s2868_s14 + $0xb8] sm:$0xff] %v1429_v2  ;;  %v1431_v4 = vpop.f32.mrb[15].mxu0 }
 0x399   : > { %1683 = vst [vmem:[%s2868_s14 + $0xc0] sm:$0xff] %v1431_v4 }
 0x39b   : > { %v1435_v5 = vpop.f32.mrb[16].mxu0 }
 0x39c   : > { %1689 = vst [vmem:[%s2868_s14 + $0xf0] sm:$0xff] %v1435_v5  ;;  %v1437_v6 = vpop.f32.mrb[17].mxu0 }
 0x39d   : > { %1690 = vst [vmem:[%s2868_s14 + $0xf8] sm:$0xff] %v1437_v6 }
 0x39f   : > { %v1441_v7 = vpop.f32.mrb[18].mxu0 }
 0x3a0   : > { %1696 = vst [vmem:[%s2868_s14 + $0x128] sm:$0xff] %v1441_v7  ;;  %v1443_v8 = vpop.f32.mrb[19].mxu0 }
 0x3a1   : > { %1697 = vst [vmem:[%s2868_s14 + $0x130] sm:$0xff] %v1443_v8 }
 0x3a3   : > { %v1625_v9 = vpop.f32.mrb[20].mxu0 }
 0x3a4   : > { %1665 = vst [vmem:[%s2868_s14 + $0x30] sm:$0xff] %v1625_v9  ;;  %v1884_v10 = vpop.f32.mrb[21].mxu0 }
 0x3a7   : > { %v1630_v11 = vpop.f32.mrb[22].mxu0 }
 0x3a8   : > { %1672 = vst [vmem:[%s2868_s14 + $0x68] sm:$0xff] %v1630_v11  ;;  %v1887_v12 = vpop.f32.mrb[23].mxu0 }
 0x3ab   : > { %v1635_v13 = vpop.f32.mrb[24].mxu0 }
 0x3ac   : > { %1679 = vst [vmem:[%s2868_s14 + $0xa0] sm:$0xff] %v1635_v13  ;;  %v1890_v14 = vpop.f32.mrb[25].mxu0 }
 0x3af   : > { %v1640_v15 = vpop.f32.mrb[26].mxu0 }
 0x3b0   : > { %1686 = vst [vmem:[%s2868_s14 + $0xd8] sm:$0xff] %v1640_v15  ;;  %v1893_v16 = vpop.f32.mrb[27].mxu0 }
 0x3b3   : > { %v1645_v18 = vpop.f32.mrb[28].mxu0 }
 0x3b4   : > { %1693 = vst [vmem:[%s2868_s14 + $0x110] sm:$0xff] %v1645_v18  ;;  %v1896_v19 = vpop.f32.mrb[29].mxu0 }
 0x3b7   : > { %v1650_v20 = vpop.f32.mrb[30].mxu0 }
 0x3b8   : > { %1700 = vst [vmem:[%s2868_s14 + $0x148] sm:$0xff] %v1650_v20  ;;  %v1899_v33 = vpop.f32.mrb[31].mxu0 }
 0x3bb   : > { %v1655_v40 = vpop.f32.mrb[32].mxu0 }
 0x3bc   : > { %1707 = vst [vmem:[%s2868_s14 + $0x180] sm:$0xff] %v1655_v40  ;;  %v1902_v21 = vpop.f32.mrb[33].mxu0 }
 0x3c3   : > { %v1518_v41 = vpop.f32.mrb[28].mxu1 }
 0x3c4   : > { %1663 = vst [vmem:[%s2868_s14 + $0x20] sm:$0xff] %v1518_v41  ;;  %v1520_v22 = vpop.f32.mrb[29].mxu1 }
 0x3c5   : > { %1664 = vst [vmem:[%s2868_s14 + $0x28] sm:$0xff] %v1520_v22 }
 0x3c7   : > { %v1524_v29 = vpop.f32.mrb[30].mxu1 }
 0x3c8   : > { %1670 = vst [vmem:[%s2868_s14 + $0x58] sm:$0xff] %v1524_v29  ;;  %v1526_v23 = vpop.f32.mrb[31].mxu1 }
 0x3c9   : > { %1671 = vst [vmem:[%s2868_s14 + $0x60] sm:$0xff] %v1526_v23 }
 0x3cb   : > { %v1530_v24 = vpop.f32.mrb[32].mxu1 }
 0x3cc   : > { %1677 = vst [vmem:[%s2868_s14 + $0x90] sm:$0xff] %v1530_v24  ;;  %v1532_v25 = vpop.f32.mrb[33].mxu1 }
 0x3cd   : > { %1678 = vst [vmem:[%s2868_s14 + $0x98] sm:$0xff] %v1532_v25 }
 0x3cf   : > { %v1536_v26 = vpop.f32.mrb[34].mxu1 }
 0x3d0   : > { %1684 = vst [vmem:[%s2868_s14 + $0xc8] sm:$0xff] %v1536_v26  ;;  %v1538_v27 = vpop.f32.mrb[35].mxu1 }
 0x3d1   : > { %1685 = vst [vmem:[%s2868_s14 + $0xd0] sm:$0xff] %v1538_v27 }
 0x3d3   : > { %v1542_v28 = vpop.f32.mrb[36].mxu1 }
 0x3d4   : > { %1691 = vst [vmem:[%s2868_s14 + $0x100] sm:$0xff] %v1542_v28  ;;  %v1544_v31 = vpop.f32.mrb[37].mxu1 }
 0x3d5   : > { %1692 = vst [vmem:[%s2868_s14 + $0x108] sm:$0xff] %v1544_v31 }
 0x3d7   : > { %v1548_v35 = vpop.f32.mrb[38].mxu1 }
 0x3d8   : > { %1698 = vst [vmem:[%s2868_s14 + $0x138] sm:$0xff] %v1548_v35  ;;  %v1550_v36 = vpop.f32.mrb[39].mxu1 }
 0x3d9   : > { %1699 = vst [vmem:[%s2868_s14 + $0x140] sm:$0xff] %v1550_v36 }
 0x3db   : > { %v1554_v37 = vpop.f32.mrb[40].mxu1 }
 0x3dc   : > { %1705 = vst [vmem:[%s2868_s14 + $0x170] sm:$0xff] %v1554_v37  ;;  %v1556_v38 = vpop.f32.mrb[41].mxu1 }
 0x3dd   : > { %1706 = vst [vmem:[%s2868_s14 + $0x178] sm:$0xff] %v1556_v38 }
 0x3de   : > { %2406 = shalt.err (!%p2403_p11)
}
 0x3df   : > { %s2407_s8 = scalar_lea.hbm %s2922_s23, 6272  ;;  %s2411_s11 = scalar_lea.hbm %s2976_s5, 12544 }
 0x3e0   : > { %p2408_p13 = scmp.ne.s32.totalorder %s2922_s23, %s2407_s8  ;;  %p2412_p6 = scmp.lt.u32.totalorder %s2922_s23, %s2976_s5 }
 0x3e1   : > { %p2413_p9 = scmp.lt.u32.totalorder %s2411_s11, %s2407_s8  ;;  %p2415_p12 = scmp.lt.u32.totalorder %s2407_s8, %s2922_s23 }
 0x3e2   : > { %p2409_p0 = pnand %p2408_p13, %p2991_p1 }
 0x3e3   : > { %p2414_p10 = por %p2413_p9, %p2412_p6 }
 0x3e4   : > { %p2410_p5 = pneg %p2409_p0 }
 0x3e5   : > { %p2416_p2 = por %p2415_p12, %p2414_p10 }
 0x3e7   : > { %p2417_p3 = pnand %p2416_p2, %p2410_p5 }
 0x3e9   : > { %2420 = shalt.err (!%p2417_p3)
}
 0x3ea   : > { %s2476_s14 = smov 896   ;;  %s2477_s15 = smov 56  }
 0x3eb   : > { %2275 = dma.vmem_to_hbm [thread:$0]  (%p2991_p1), %s2924_s16, 6272, %s2922_s23, %s2930_s22, %s2476_s14, %s2476_s14, %s2477_s15  }
 0x3ec PF: > { %p2292_p4 = scmp.ge.s32.totalorder %s2463_s21, 2  ;;  %s1737_s17 = sand.u32 1, %s2451_s18  }
 0x3ed   : > { %p2992_p7 = scmp.ne.s32.totalorder %s2981_s29, 0  ;;  %s1738_s7 = scalar_lea.sflag [#allocation4], %s1737_s17 }
 0x3ef   : > { %p2285_p8 = pnand %p2292_p4, %p2992_p7 }
 0x3f1   : > { %2446 = dma.done.wait (!%p2285_p8), %s1738_s7, 6272  }
 0x3f2   : > { %2448 = vsyncadd (!%p2285_p8), %s1738_s7, 4294961024  ;;  %p17_p11 = scmp.ge.s32.totalorder %s2533_s24, 4   ;;  %s2993_s18 = smov %s2455_s19 }
 0x3f3   : > { %s2994_s19 = smov %s2459_s20  ;;  %s2995_s20 = smov %s2544_s27 }
 0x3f4   : > { %s2996_s21 = smov %s2533_s24  ;;  %19 = sbr.rel (!%p17_p11) target bundleno = 5 (0x5), region = 86 }
 0x3fb   :  { %1743 = vsyncpa [#allocation3], 1 }
 0x3fc   :  { %1745 = vsyncpa [#allocation3 + $0x1], 1 }
 0x3fd   :  { %1746 = vsyncpa [#allocation6], 1 }
 0x3fe   :  { %1747 = vsyncpa [#allocation4], 1 }
 0x3ff   :  { %1749 = vsyncpa [#allocation4 + $0x1], 1 }

</bundles_post_ra>
